<compile_context>
chip_gen: v7x
topology: tpu7x:2x2x1
jax: 0.10.0
libtpu: 0.0.40
codegen_flags: <defaults>
</compile_context>

<pallas_src>
import math
from functools import partial

import jax
import jax.numpy as jnp
from jax import lax
from jax.experimental import pallas as pl
from jax.experimental.pallas import tpu as pltpu


_LN_EPS = 1e-5
_MASK_NEG = -1e30        # additive key-padding mask (f32)
_COL_NEG = -3.0e38       # logit value for padded tag columns (finite in f32)


# ----------------------------------------------------------------------------------
# Per-chip sizing (VMEM headroom + row tile), queried once at import time.
# ----------------------------------------------------------------------------------

def _query_vmem_capacity():
    try:
        info = pltpu.get_tpu_info()
        cap = getattr(info, "vmem_capacity_bytes", None)
        if cap:
            return int(cap)
    except Exception:
        pass
    return 128 * 1024 * 1024


_VMEM_CAP = _query_vmem_capacity()
# Leave ~35% headroom for double buffers / compiler-internal scratch (critical on
# v7x where physical VMEM is only 64 MiB per TensorCore).
_VMEM_LIMIT = min(int(_VMEM_CAP * 0.65), 100 * 1024 * 1024)
# Bigger row tiles on 128 MiB parts (v5e/v6e), conservative on 64 MiB parts (v7x).
_ROW_TILE = 512 if _VMEM_CAP >= 96 * 1024 * 1024 else 256


# ----------------------------------------------------------------------------------
# Pallas kernels
# ----------------------------------------------------------------------------------

def _linear_kernel(x_ref, w_ref, b_ref, o_ref):
    # x: (TM, K) f32   w: (K, N) bf16   b: (1, N) f32
    x = x_ref[...].astype(jnp.bfloat16)
    o_ref[...] = (jnp.dot(x, w_ref[...], preferred_element_type=jnp.float32)
                  + b_ref[...]).astype(o_ref.dtype)


def linear_pallas(x2d, w_bf16, b, *, tm=None):
    M, K = x2d.shape
    N = w_bf16.shape[1]
    TM = min(tm or _ROW_TILE, M)
    return pl.pallas_call(
        _linear_kernel,
        out_shape=jax.ShapeDtypeStruct((M, N), jnp.float32),
        grid=(pl.cdiv(M, TM),),
        in_specs=[pl.BlockSpec((TM, K), lambda i: (i, 0)),
                  pl.BlockSpec((K, N), lambda i: (0, 0)),
                  pl.BlockSpec((1, N), lambda i: (0, 0))],
        out_specs=pl.BlockSpec((TM, N), lambda i: (i, 0)),
        compiler_params=pltpu.CompilerParams(
            dimension_semantics=("parallel",),
            vmem_limit_bytes=_VMEM_LIMIT),
    )(x2d, w_bf16, b.reshape(1, N))


def _mha_ln_kernel(len_ref, x_ref, wqkv_ref, bqkv_ref, wo_ref, bo_ref,
                   g_ref, beta_ref, o_ref, ctx_ref, *, nhead, scale, eps, q_tile):
    # One batch element per grid step.  Fused: QKV proj -> per-(q-tile, head)
    # attention writing ctx into a (S, H) bf16 scratch -> ONE (S,H)@(H,H) bf16
    # out-projection (K = H, fills the MXU) -> residual + LayerNorm (norm1).
    b = pl.program_id(0)
    x = x_ref[0]                                   # (S, H) f32
    S, H = x.shape
    hd = H // nhead

    # Additive key-padding mask built from prefetched lengths (no HBM mask array).
    L = len_ref[b]
    kpos = lax.broadcasted_iota(jnp.int32, (1, S), 1)
    madd = jnp.where(kpos < L, 0.0, _MASK_NEG).astype(jnp.float32)      # (1, S)

    xb = x.astype(jnp.bfloat16)
    # qkv held in bf16 (single cast after adding bias in f32) -> halves the largest
    # per-step VMEM intermediate.
    qkv = (jnp.dot(xb, wqkv_ref[...], preferred_element_type=jnp.float32)
           + bqkv_ref[...]).astype(jnp.bfloat16)   # (S, 3H) bf16

    # Inner q-tile loop bounds the f32 score tile to (q_tile, S) instead of (S, S).
    # NOTE: heads stay a static Python loop and per-head slices hit non-128 lane
    # offsets when hd < 128; a head grid axis / head-major relayout was deliberately
    # not used to keep the kernel robust at small, unaligned dims.
    n_q = S // q_tile
    for qt in range(n_q):
        r0, r1 = qt * q_tile, (qt + 1) * q_tile
        for h in range(nhead):
            qh = qkv[r0:r1, h * hd:(h + 1) * hd]                    # (TQ, hd) bf16
            kh = qkv[:, H + h * hd:H + (h + 1) * hd]                # (S, hd) bf16
            vh = qkv[:, 2 * H + h * hd:2 * H + (h + 1) * hd]        # (S, hd) bf16
            s = lax.dot_general(qh, kh, (((1,), (1,)), ((), ())),
                                preferred_element_type=jnp.float32)  # (TQ, S)
            s = s * scale + madd
            m = jnp.max(s, axis=-1, keepdims=True)
            p = jnp.exp(s - m)
            p = p * pl.reciprocal(jnp.sum(p, axis=-1, keepdims=True), approx=True)
            ctxh = jnp.dot(p.astype(jnp.bfloat16), vh,
                           preferred_element_type=jnp.float32)       # (TQ, hd)
            ctx_ref[r0:r1, h * hd:(h + 1) * hd] = ctxh.astype(jnp.bfloat16)

    # Single out-projection with K = H (replaces nhead K=hd matmuls + f32 adds).
    attn = (jnp.dot(ctx_ref[...], wo_ref[...], preferred_element_type=jnp.float32)
            + bo_ref[...])

    # Fused residual + LayerNorm (norm1), f32.
    srcs = x + attn
    mu = jnp.mean(srcs, axis=-1, keepdims=True)
    var = jnp.mean(jnp.square(srcs - mu), axis=-1, keepdims=True)
    o_ref[0] = ((srcs - mu) * lax.rsqrt(var + eps)) * g_ref[...] + beta_ref[...]


def mha_ln_pallas(x, lengths, lp, nhead):
    B, S, H = x.shape
    assert H % nhead == 0
    hd = H // nhead
    scale = 1.0 / math.sqrt(hd)

    # q-tile size: cap the f32 score tile; fall back to full S if it doesn't divide.
    if S <= 128:
        q_tile = S
    else:
        q_tile = 128 if S % 128 == 0 else S

    flops = 2 * B * S * H * (3 * H + H) + 4 * B * nhead * S * S * hd
    cost = pl.CostEstimate(
        flops=flops,
        transcendentals=B * nhead * S * S,
        bytes_accessed=2 * 4 * B * S * H + 2 * 2 * H * H + 2 * 3 * H * H)

    grid_spec = pltpu.PrefetchScalarGridSpec(
        num_scalar_prefetch=1,
        grid=(B,),
        in_specs=[
            pl.BlockSpec((1, S, H), lambda b, lens: (b, 0, 0)),     # x
            pl.BlockSpec((H, 3 * H), lambda b, lens: (0, 0)),       # fused qkv weight (bf16)
            pl.BlockSpec((1, 3 * H), lambda b, lens: (0, 0)),       # fused qkv bias (f32)
            pl.BlockSpec((H, H), lambda b, lens: (0, 0)),           # out-proj weight (bf16)
            pl.BlockSpec((1, H), lambda b, lens: (0, 0)),           # out-proj bias
            pl.BlockSpec((1, H), lambda b, lens: (0, 0)),           # ln1 gamma
            pl.BlockSpec((1, H), lambda b, lens: (0, 0)),           # ln1 beta
        ],
        out_specs=pl.BlockSpec((1, S, H), lambda b, lens: (b, 0, 0)),
        scratch_shapes=[pltpu.VMEM((S, H), jnp.bfloat16)],          # per-head ctx buffer
    )
    return pl.pallas_call(
        partial(_mha_ln_kernel, nhead=nhead, scale=scale, eps=_LN_EPS, q_tile=q_tile),
        out_shape=jax.ShapeDtypeStruct((B, S, H), jnp.float32),
        grid_spec=grid_spec,
        compiler_params=pltpu.CompilerParams(
            dimension_semantics=("parallel",),
            vmem_limit_bytes=_VMEM_LIMIT),
        cost_estimate=cost,
    )(lengths, x, lp["wqkv"], lp["bqkv"], lp["wo"], lp["bo"], lp["ln1_g"], lp["ln1_b"])


def _ffn_ln_kernel(x_ref, w1_ref, b1_ref, w2_ref, b2_ref, g_ref, beta_ref, o_ref, *, eps):
    # Fused: Linear -> ReLU -> Linear -> residual add -> LayerNorm (norm2).
    x = x_ref[...]                                 # (TM, H) f32
    h = jnp.dot(x.astype(jnp.bfloat16), w1_ref[...],
                preferred_element_type=jnp.float32) + b1_ref[...]
    h = jnp.maximum(h, 0.0)
    y = jnp.dot(h.astype(jnp.bfloat16), w2_ref[...],
                preferred_element_type=jnp.float32) + b2_ref[...]
    s = x + y
    mu = jnp.mean(s, axis=-1, keepdims=True)
    var = jnp.mean(jnp.square(s - mu), axis=-1, keepdims=True)
    o_ref[...] = ((s - mu) * lax.rsqrt(var + eps)) * g_ref[...] + beta_ref[...]


def ffn_ln_pallas(x2d, lp, *, tm=None):
    M, H = x2d.shape
    F = lp["w1"].shape[1]
    TM = min(tm or _ROW_TILE, M)
    cost = pl.CostEstimate(flops=4 * M * H * F, transcendentals=0,
                           bytes_accessed=2 * 4 * M * H + 2 * 2 * H * F)
    return pl.pallas_call(
        partial(_ffn_ln_kernel, eps=_LN_EPS),
        out_shape=jax.ShapeDtypeStruct((M, H), jnp.float32),
        grid=(pl.cdiv(M, TM),),
        in_specs=[pl.BlockSpec((TM, H), lambda i: (i, 0)),
                  pl.BlockSpec((H, F), lambda i: (0, 0)),
                  pl.BlockSpec((1, F), lambda i: (0, 0)),
                  pl.BlockSpec((F, H), lambda i: (0, 0)),
                  pl.BlockSpec((1, H), lambda i: (0, 0)),
                  pl.BlockSpec((1, H), lambda i: (0, 0)),
                  pl.BlockSpec((1, H), lambda i: (0, 0))],
        out_specs=pl.BlockSpec((TM, H), lambda i: (i, 0)),
        compiler_params=pltpu.CompilerParams(
            dimension_semantics=("parallel",),
            vmem_limit_bytes=_VMEM_LIMIT),
        cost_estimate=cost,
    )(x2d, lp["w1"], lp["b1"], lp["w2"], lp["b2"], lp["ln2_g"], lp["ln2_b"])


def _tag_kernel(h_ref, w_ref, b_ref, mask_ref, lbl_ref, prob_ref, nll_ref, cnt_ref,
                *, num_tags, pad_id, total_rows, tile_rows):
    # h: (TM,H)  w: (H,Tp) bf16 (tag dim padded to 128 lanes)  mask,lbl: (TM,1)
    logits = (jnp.dot(h_ref[...].astype(jnp.bfloat16), w_ref[...],
                      preferred_element_type=jnp.float32) + b_ref[...])    # (TM, Tp)
    # logits += (1 - mask) * -1e32 (broadcast over tag dim, matches PyTorch repeat)
    logits = logits + (1.0 - mask_ref[...]) * (-1e32)
    col = lax.broadcasted_iota(jnp.int32, logits.shape, 1)
    logits = jnp.where(col < num_tags, logits, _COL_NEG)   # kill padded tag columns
    m = jnp.max(logits, axis=-1, keepdims=True)
    e = jnp.exp(logits - m)
    z = jnp.sum(e, axis=-1, keepdims=True)
    prob_ref[...] = e / z

    # cross-entropy pieces (ignore_index = pad_id), reduced to per-tile scalars so
    # only (num_tiles, 1) partial sums hit HBM instead of (M, 1) masked stores.
    logz = m + jnp.log(z)                         # (TM, 1)
    lbl = lbl_ref[...]                            # (TM, 1) int32
    picked = jnp.sum(jnp.where(col == lbl, logits, 0.0), axis=-1, keepdims=True)
    row = (lax.broadcasted_iota(jnp.int32, lbl.shape, 0)
           + pl.program_id(0) * tile_rows)
    valid = jnp.logical_and(lbl != pad_id, row < total_rows)
    nll = jnp.where(valid, logz - picked, 0.0)    # where(): garbage boundary rows -> 0
    nll_ref[...] = jnp.sum(nll).reshape(1, 1)
    cnt_ref[...] = jnp.sum(valid.astype(jnp.float32)).reshape(1, 1)


def tag_pallas(h2d, w_pad_bf16, b_pad, mask2d, labels2d, *, num_tags, pad_id, tm=None):
    M, H = h2d.shape
    TP = w_pad_bf16.shape[1]
    TM = min(tm or _ROW_TILE, M)
    ntiles = pl.cdiv(M, TM)
    return pl.pallas_call(
        partial(_tag_kernel, num_tags=num_tags, pad_id=pad_id,
                total_rows=M, tile_rows=TM),
        out_shape=(jax.ShapeDtypeStruct((M, TP), jnp.float32),
                   jax.ShapeDtypeStruct((ntiles, 1), jnp.float32),
                   jax.ShapeDtypeStruct((ntiles, 1), jnp.float32)),
        grid=(ntiles,),
        in_specs=[pl.BlockSpec((TM, H), lambda i: (i, 0)),
                  pl.BlockSpec((H, TP), lambda i: (0, 0)),
                  pl.BlockSpec((1, TP), lambda i: (0, 0)),
                  pl.BlockSpec((TM, 1), lambda i: (i, 0)),
                  pl.BlockSpec((TM, 1), lambda i: (i, 0))],
        out_specs=(pl.BlockSpec((TM, TP), lambda i: (i, 0)),
                   pl.BlockSpec((1, 1), lambda i: (i, 0)),
                   pl.BlockSpec((1, 1), lambda i: (i, 0))),
        compiler_params=pltpu.CompilerParams(
            dimension_semantics=("parallel",),
            vmem_limit_bytes=_VMEM_LIMIT),
    )(h2d, w_pad_bf16, b_pad, mask2d, labels2d)


# ----------------------------------------------------------------------------------
# One-time parameter packing (outside the jitted forward path)
# ----------------------------------------------------------------------------------

def prepare_params(params):
    """Concat QKV, cast matmul weights to bf16, lane-pad the tag head. Run once."""
    H = params["proj_w"].shape[1]
    T = params["out_w"].shape[1]
    TP = ((T + 127) // 128) * 128
    out_w_pad = jnp.zeros((H, TP), jnp.float32).at[:, :T].set(params["out_w"])
    out_b_pad = jnp.zeros((1, TP), jnp.float32).at[0, :T].set(params["out_b"])
    prepped = {
        "embed": params["embed"],
        "proj_w": params["proj_w"].astype(jnp.bfloat16),
        "proj_b": params["proj_b"],
        "out_w_pad": out_w_pad.astype(jnp.bfloat16),
        "out_b_pad": out_b_pad,
        "layers": [],
    }
    for lp in params["layers"]:
        F = lp["w1"].shape[1]
        prepped["layers"].append({
            "wqkv": jnp.concatenate([lp["wq"], lp["wk"], lp["wv"]],
                                    axis=1).astype(jnp.bfloat16),
            "bqkv": jnp.concatenate([lp["bq"], lp["bk"], lp["bv"]]).reshape(1, 3 * H),
            "wo": lp["wo"].astype(jnp.bfloat16),
            "bo": lp["bo"].reshape(1, H),
            "w1": lp["w1"].astype(jnp.bfloat16),
            "b1": lp["b1"].reshape(1, F),
            "w2": lp["w2"].astype(jnp.bfloat16),
            "b2": lp["b2"].reshape(1, H),
            "ln1_g": lp["ln1_g"].reshape(1, H),
            "ln1_b": lp["ln1_b"].reshape(1, H),
            "ln2_g": lp["ln2_g"].reshape(1, H),
            "ln2_b": lp["ln2_b"].reshape(1, H),
        })
    return prepped


# ----------------------------------------------------------------------------------
# Model wrapper (glue in plain JAX)
# ----------------------------------------------------------------------------------

def encoder_layer_forward(x, lengths, lp, nhead):
    """PyTorch TransformerEncoderLayer (post-norm, ReLU, dropout=identity)."""
    B, S, H = x.shape
    h1 = mha_ln_pallas(x, lengths, lp, nhead)                  # norm1(src + attn)
    h2 = ffn_ln_pallas(h1.reshape(B * S, H), lp)               # norm2(h1 + ffn)
    return h2.reshape(B, S, H)


def transformer_crf_forward(params, input_ids, lengths, tag_mask, tag_ids,
                            *, nhead, pad_id, num_tags):
    # Embedding lookup (gather) in plain JAX glue; padding_idx=0 row is zero.
    emb = params["embed"][input_ids]                           # (B, S, E)
    B, S, E = emb.shape
    H = params["proj_w"].shape[1]

    tgt = linear_pallas(emb.reshape(B * S, E),
                        params["proj_w"], params["proj_b"]).reshape(B, S, H)
    # has_pos=False in the reference default -> no positional encoding.

    x = tgt
    for lp in params["layers"]:
        x = encoder_layer_forward(x, lengths, lp, nhead)
    hiddens = x                                                # dropout -> identity

    prob_p, nll_part, cnt_part = tag_pallas(
        hiddens.reshape(B * S, H),
        params["out_w_pad"], params["out_b_pad"],
        tag_mask.reshape(B * S, 1).astype(jnp.float32),
        tag_ids.reshape(B * S, 1).astype(jnp.int32),
        num_tags=num_tags, pad_id=pad_id)
    prob = prob_p[:, :num_tags].reshape(B, S, num_tags)
    loss = jnp.sum(nll_part) / jnp.maximum(jnp.sum(cnt_part), 1.0)   # CE mean
    return prob, loss


# ----------------------------------------------------------------------------------
# Deterministic parameter init
# ----------------------------------------------------------------------------------

def init_params(key, *, vocab_size, embed_size, hidden_size, num_tags,
                num_layers, dim_feedforward):
    def nrm(k, shape, scale=0.05):
        return (scale * jax.random.normal(k, shape)).astype(jnp.float32)

    keys = jax.random.split(key, 4 + num_layers)
    embed = nrm(keys[0], (vocab_size, embed_size))
    embed = embed.at[0].set(0.0)                      # padding_idx=0
    params = {
        "embed": embed,
        "proj_w": nrm(keys[1], (embed_size, hidden_size)),
        "proj_b": jnp.zeros((hidden_size,), jnp.float32),
        "out_w": nrm(keys[2], (hidden_size, num_tags)),
        "out_b": jnp.zeros((num_tags,), jnp.float32),
        "layers": [],
    }
    for li in range(num_layers):
        lk = jax.random.split(keys[4 + li], 8)
        params["layers"].append({
            "wq": nrm(lk[0], (hidden_size, hidden_size)),
            "bq": jnp.zeros((hidden_size,), jnp.float32),
            "wk": nrm(lk[1], (hidden_size, hidden_size)),
            "bk": jnp.zeros((hidden_size,), jnp.float32),
            "wv": nrm(lk[2], (hidden_size, hidden_size)),
            "bv": jnp.zeros((hidden_size,), jnp.float32),
            "wo": nrm(lk[3], (hidden_size, hidden_size)),
            "bo": jnp.zeros((hidden_size,), jnp.float32),
            "w1": nrm(lk[4], (hidden_size, dim_feedforward)),
            "b1": jnp.zeros((dim_feedforward,), jnp.float32),
            "w2": nrm(lk[5], (dim_feedforward, hidden_size)),
            "b2": jnp.zeros((hidden_size,), jnp.float32),
            "ln1_g": jnp.ones((hidden_size,), jnp.float32),
            "ln1_b": jnp.zeros((hidden_size,), jnp.float32),
            "ln2_g": jnp.ones((hidden_size,), jnp.float32),
            "ln2_b": jnp.zeros((hidden_size,), jnp.float32),
        })
    return params


# ----------------------------------------------------------------------------------
# Main
# ----------------------------------------------------------------------------------

if __name__ == "__main__":
    # synthetic config (small shapes)
    VOCAB, EMBED, HIDDEN, NUM_TAGS = 100, 32, 32, 10
    NHEAD, NUM_LAYERS, DFF = 4, 4, 64
    TAG_PAD_IDX = 0
    B, S = 2, 8

    key = jax.random.PRNGKey(0)
    kp, kx, kt = jax.random.split(key, 3)

    params = init_params(kp, vocab_size=VOCAB, embed_size=EMBED, hidden_size=HIDDEN,
                         num_tags=NUM_TAGS, num_layers=NUM_LAYERS,
                         dim_feedforward=DFF)
    packed = prepare_params(params)          # one-time weight packing, not per-forward

    lengths = jnp.array([8, 5], dtype=jnp.int32)
    pos = jnp.arange(S, dtype=jnp.int32)[None, :]
    valid = (pos < lengths[:, None])

    input_ids = jax.random.randint(kx, (B, S), 1, VOCAB).astype(jnp.int32)
    input_ids = jnp.where(valid, input_ids, 0)                      # pad token = 0
    tag_ids = jax.random.randint(kt, (B, S), 1, NUM_TAGS).astype(jnp.int32)
    tag_ids = jnp.where(valid, tag_ids, TAG_PAD_IDX)
    tag_mask = valid.astype(jnp.float32)

    fwd = jax.jit(partial(transformer_crf_forward, nhead=NHEAD, pad_id=TAG_PAD_IDX,
                          num_tags=NUM_TAGS))
    prob, loss = fwd(packed, input_ids, lengths, tag_mask, tag_ids)
    jax.block_until_ready((prob, loss))

    assert prob.shape == (B, S, NUM_TAGS)
    assert bool(jnp.all(jnp.isfinite(prob))) and bool(jnp.isfinite(loss))
    # softmax rows should sum to 1
    assert bool(jnp.allclose(jnp.sum(prob, axis=-1), 1.0, atol=1e-4))

    # TODO(synk): `decode()` (BIO tag string post-processing) is host-side Python string
    # logic and is intentionally not translated to a kernel.
    print("KERNEL_OK")
</pallas_src>

<mosaic_0001>
module attributes {stable_mosaic.version = 11 : i64} {
  func.func @_mha_ln_kernel(%arg0: i32, %arg1: memref<2xi32, #tpu.memory_space<smem>>, %arg2: memref<1x8x32xf32, #tpu.memory_space<vmem>>, %arg3: memref<32x96xbf16, #tpu.memory_space<vmem>>, %arg4: memref<1x96xf32, #tpu.memory_space<vmem>>, %arg5: memref<32x32xbf16, #tpu.memory_space<vmem>>, %arg6: memref<1x32xf32, #tpu.memory_space<vmem>>, %arg7: memref<1x32xf32, #tpu.memory_space<vmem>>, %arg8: memref<1x32xf32, #tpu.memory_space<vmem>>, %arg9: memref<1x8x32xf32, #tpu.memory_space<vmem>>, %arg10: memref<8x32xbf16, #tpu.memory_space<vmem>>) attributes {dimension_semantics = [#tpu.dimension_semantics<parallel>], iteration_bounds = array<i64: 2>, scalar_prefetch = 1 : i64, scratch_operands = 1 : i64, tpu.core_type = #tpu.core_type<tc>, window_params = [{transform_indices = @transform_0, window_bounds = array<i64: 1, 8, 32>}, {pipeline_mode = #tpu.pipeline_mode<synchronous>, transform_indices = @transform_1, window_bounds = array<i64: 32, 96>}, {pipeline_mode = #tpu.pipeline_mode<synchronous>, transform_indices = @transform_2, window_bounds = array<i64: 1, 96>}, {pipeline_mode = #tpu.pipeline_mode<synchronous>, transform_indices = @transform_3, window_bounds = array<i64: 32, 32>}, {pipeline_mode = #tpu.pipeline_mode<synchronous>, transform_indices = @transform_4, window_bounds = array<i64: 1, 32>}, {pipeline_mode = #tpu.pipeline_mode<synchronous>, transform_indices = @transform_5, window_bounds = array<i64: 1, 32>}, {pipeline_mode = #tpu.pipeline_mode<synchronous>, transform_indices = @transform_6, window_bounds = array<i64: 1, 32>}, {transform_indices = @transform_7, window_bounds = array<i64: 1, 8, 32>}]} {
    %c0 = arith.constant 0 : index
    %c0_0 = arith.constant 0 : index
    %c0_1 = arith.constant 0 : index
    %0 = vector.load %arg2[%c0, %c0_0, %c0_1] : memref<1x8x32xf32, #tpu.memory_space<vmem>>, vector<1x8x32xf32>
    %1 = vector.shape_cast %0 : vector<1x8x32xf32> to vector<8x32xf32>
    %2 = arith.index_cast %arg0 : i32 to index
    %3 = memref.load %arg1[%2] : memref<2xi32, #tpu.memory_space<smem>>
    %4 = tpu.iota {dimensions = array<i32: 1>} : vector<1x8xi32>
    %5 = vector.broadcast %3 : i32 to vector<1x8xi32>
    %6 = arith.cmpi slt, %4, %5 : vector<1x8xi32>
    %cst = arith.constant 0.000000e+00 : f32
    %cst_2 = arith.constant -1.000000e+30 : f32
    %7 = vector.broadcast %cst : f32 to vector<1x8xf32>
    %8 = vector.broadcast %cst_2 : f32 to vector<1x8xf32>
    %9 = arith.select %6, %7, %8 : vector<1x8xi1>, vector<1x8xf32>
    %10 = arith.truncf %1 : vector<8x32xf32> to vector<8x32xbf16>
    %c0_3 = arith.constant 0 : index
    %c0_4 = arith.constant 0 : index
    %11 = vector.load %arg3[%c0_3, %c0_4] : memref<32x96xbf16, #tpu.memory_space<vmem>>, vector<32x96xbf16>
    %cst_5 = arith.constant dense<0.000000e+00> : vector<8x96xf32>
    %12 = tpu.matmul %10, %11, %cst_5 {dimension_numbers = #tpu.dot_dimension_numbers<[1], [0], [0], [1], [0, 0, 1, 1], [], []>} : vector<8x32xbf16>, vector<32x96xbf16>, vector<8x96xf32> -> vector<8x96xf32>
    %c0_6 = arith.constant 0 : index
    %c0_7 = arith.constant 0 : index
    %13 = vector.load %arg4[%c0_6, %c0_7] : memref<1x96xf32, #tpu.memory_space<vmem>>, vector<1x96xf32>
    %14 = vector.broadcast %13 : vector<1x96xf32> to vector<8x96xf32>
    %15 = arith.addf %12, %14 : vector<8x96xf32>
    %16 = arith.truncf %15 : vector<8x96xf32> to vector<8x96xbf16>
    %17 = vector.extract_strided_slice %16 {offsets = [0, 0], sizes = [8, 8], strides = [1, 1]} : vector<8x96xbf16> to vector<8x8xbf16>
    %18 = vector.extract_strided_slice %16 {offsets = [0, 32], sizes = [8, 8], strides = [1, 1]} : vector<8x96xbf16> to vector<8x8xbf16>
    %19 = vector.extract_strided_slice %16 {offsets = [0, 64], sizes = [8, 8], strides = [1, 1]} : vector<8x96xbf16> to vector<8x8xbf16>
    %cst_8 = arith.constant dense<0.000000e+00> : vector<8x8xf32>
    %20 = tpu.matmul %17, %18, %cst_8 {dimension_numbers = #tpu.dot_dimension_numbers<[1], [1], [0], [0], [0, 0, 1, 0], [], []>} : vector<8x8xbf16>, vector<8x8xbf16>, vector<8x8xf32> -> vector<8x8xf32>
    %cst_9 = arith.constant 0.353553385 : f32
    %21 = vector.broadcast %cst_9 : f32 to vector<8x8xf32>
    %22 = arith.mulf %20, %21 : vector<8x8xf32>
    %23 = vector.broadcast %9 : vector<1x8xf32> to vector<8x8xf32>
    %24 = arith.addf %22, %23 : vector<8x8xf32>
    %cst_10 = arith.constant dense<0xFF800000> : vector<8xf32>
    %25 = vector.multi_reduction <maximumf>, %24, %cst_10 [1] : vector<8x8xf32> to vector<8xf32>
    %26 = vector.shape_cast %25 : vector<8xf32> to vector<8x1xf32>
    %27 = vector.broadcast %26 : vector<8x1xf32> to vector<8x8xf32>
    %28 = arith.subf %24, %27 : vector<8x8xf32>
    %29 = math.exp %28 : vector<8x8xf32>
    %cst_11 = arith.constant dense<0.000000e+00> : vector<8xf32>
    %30 = vector.multi_reduction <add>, %29, %cst_11 [1] : vector<8x8xf32> to vector<8xf32>
    %31 = vector.shape_cast %30 : vector<8xf32> to vector<8x1xf32>
    %32 = tpu.reciprocal %31 {approx = true} : vector<8x1xf32> -> vector<8x1xf32>
    %33 = vector.broadcast %32 : vector<8x1xf32> to vector<8x8xf32>
    %34 = arith.mulf %29, %33 : vector<8x8xf32>
    %35 = arith.truncf %34 : vector<8x8xf32> to vector<8x8xbf16>
    %cst_12 = arith.constant dense<0.000000e+00> : vector<8x8xf32>
    %36 = tpu.matmul %35, %19, %cst_12 {dimension_numbers = #tpu.dot_dimension_numbers<[1], [0], [0], [1], [0, 0, 1, 1], [], []>} : vector<8x8xbf16>, vector<8x8xbf16>, vector<8x8xf32> -> vector<8x8xf32>
    %37 = arith.truncf %36 : vector<8x8xf32> to vector<8x8xbf16>
    %c0_13 = arith.constant 0 : index
    %c0_14 = arith.constant 0 : index
    %38 = vector.load %arg10[%c0_13, %c0_14] : memref<8x32xbf16, #tpu.memory_space<vmem>>, vector<8x8xbf16>
    tpu.vector_store %arg10[%c0_13, %c0_14], %37 {strides = array<i32>} : memref<8x32xbf16, #tpu.memory_space<vmem>>, vector<8x8xbf16>,
    %39 = vector.extract_strided_slice %16 {offsets = [0, 8], sizes = [8, 8], strides = [1, 1]} : vector<8x96xbf16> to vector<8x8xbf16>
    %40 = vector.extract_strided_slice %16 {offsets = [0, 40], sizes = [8, 8], strides = [1, 1]} : vector<8x96xbf16> to vector<8x8xbf16>
    %41 = vector.extract_strided_slice %16 {offsets = [0, 72], sizes = [8, 8], strides = [1, 1]} : vector<8x96xbf16> to vector<8x8xbf16>
    %cst_15 = arith.constant dense<0.000000e+00> : vector<8x8xf32>
    %42 = tpu.matmul %39, %40, %cst_15 {dimension_numbers = #tpu.dot_dimension_numbers<[1], [1], [0], [0], [0, 0, 1, 0], [], []>} : vector<8x8xbf16>, vector<8x8xbf16>, vector<8x8xf32> -> vector<8x8xf32>
    %cst_16 = arith.constant 0.353553385 : f32
    %43 = vector.broadcast %cst_16 : f32 to vector<8x8xf32>
    %44 = arith.mulf %42, %43 : vector<8x8xf32>
    %45 = vector.broadcast %9 : vector<1x8xf32> to vector<8x8xf32>
    %46 = arith.addf %44, %45 : vector<8x8xf32>
    %cst_17 = arith.constant dense<0xFF800000> : vector<8xf32>
    %47 = vector.multi_reduction <maximumf>, %46, %cst_17 [1] : vector<8x8xf32> to vector<8xf32>
    %48 = vector.shape_cast %47 : vector<8xf32> to vector<8x1xf32>
    %49 = vector.broadcast %48 : vector<8x1xf32> to vector<8x8xf32>
    %50 = arith.subf %46, %49 : vector<8x8xf32>
    %51 = math.exp %50 : vector<8x8xf32>
    %cst_18 = arith.constant dense<0.000000e+00> : vector<8xf32>
    %52 = vector.multi_reduction <add>, %51, %cst_18 [1] : vector<8x8xf32> to vector<8xf32>
    %53 = vector.shape_cast %52 : vector<8xf32> to vector<8x1xf32>
    %54 = tpu.reciprocal %53 {approx = true} : vector<8x1xf32> -> vector<8x1xf32>
    %55 = vector.broadcast %54 : vector<8x1xf32> to vector<8x8xf32>
    %56 = arith.mulf %51, %55 : vector<8x8xf32>
    %57 = arith.truncf %56 : vector<8x8xf32> to vector<8x8xbf16>
    %cst_19 = arith.constant dense<0.000000e+00> : vector<8x8xf32>
    %58 = tpu.matmul %57, %41, %cst_19 {dimension_numbers = #tpu.dot_dimension_numbers<[1], [0], [0], [1], [0, 0, 1, 1], [], []>} : vector<8x8xbf16>, vector<8x8xbf16>, vector<8x8xf32> -> vector<8x8xf32>
    %59 = arith.truncf %58 : vector<8x8xf32> to vector<8x8xbf16>
    %c0_20 = arith.constant 0 : index
    %c8 = arith.constant 8 : index
    %60 = vector.load %arg10[%c0_20, %c8] : memref<8x32xbf16, #tpu.memory_space<vmem>>, vector<8x8xbf16>
    tpu.vector_store %arg10[%c0_20, %c8], %59 {strides = array<i32>} : memref<8x32xbf16, #tpu.memory_space<vmem>>, vector<8x8xbf16>,
    %61 = vector.extract_strided_slice %16 {offsets = [0, 16], sizes = [8, 8], strides = [1, 1]} : vector<8x96xbf16> to vector<8x8xbf16>
    %62 = vector.extract_strided_slice %16 {offsets = [0, 48], sizes = [8, 8], strides = [1, 1]} : vector<8x96xbf16> to vector<8x8xbf16>
    %63 = vector.extract_strided_slice %16 {offsets = [0, 80], sizes = [8, 8], strides = [1, 1]} : vector<8x96xbf16> to vector<8x8xbf16>
    %cst_21 = arith.constant dense<0.000000e+00> : vector<8x8xf32>
    %64 = tpu.matmul %61, %62, %cst_21 {dimension_numbers = #tpu.dot_dimension_numbers<[1], [1], [0], [0], [0, 0, 1, 0], [], []>} : vector<8x8xbf16>, vector<8x8xbf16>, vector<8x8xf32> -> vector<8x8xf32>
    %cst_22 = arith.constant 0.353553385 : f32
    %65 = vector.broadcast %cst_22 : f32 to vector<8x8xf32>
    %66 = arith.mulf %64, %65 : vector<8x8xf32>
    %67 = vector.broadcast %9 : vector<1x8xf32> to vector<8x8xf32>
    %68 = arith.addf %66, %67 : vector<8x8xf32>
    %cst_23 = arith.constant dense<0xFF800000> : vector<8xf32>
    %69 = vector.multi_reduction <maximumf>, %68, %cst_23 [1] : vector<8x8xf32> to vector<8xf32>
    %70 = vector.shape_cast %69 : vector<8xf32> to vector<8x1xf32>
    %71 = vector.broadcast %70 : vector<8x1xf32> to vector<8x8xf32>
    %72 = arith.subf %68, %71 : vector<8x8xf32>
    %73 = math.exp %72 : vector<8x8xf32>
    %cst_24 = arith.constant dense<0.000000e+00> : vector<8xf32>
    %74 = vector.multi_reduction <add>, %73, %cst_24 [1] : vector<8x8xf32> to vector<8xf32>
    %75 = vector.shape_cast %74 : vector<8xf32> to vector<8x1xf32>
    %76 = tpu.reciprocal %75 {approx = true} : vector<8x1xf32> -> vector<8x1xf32>
    %77 = vector.broadcast %76 : vector<8x1xf32> to vector<8x8xf32>
    %78 = arith.mulf %73, %77 : vector<8x8xf32>
    %79 = arith.truncf %78 : vector<8x8xf32> to vector<8x8xbf16>
    %cst_25 = arith.constant dense<0.000000e+00> : vector<8x8xf32>
    %80 = tpu.matmul %79, %63, %cst_25 {dimension_numbers = #tpu.dot_dimension_numbers<[1], [0], [0], [1], [0, 0, 1, 1], [], []>} : vector<8x8xbf16>, vector<8x8xbf16>, vector<8x8xf32> -> vector<8x8xf32>
    %81 = arith.truncf %80 : vector<8x8xf32> to vector<8x8xbf16>
    %c0_26 = arith.constant 0 : index
    %c16 = arith.constant 16 : index
    %82 = vector.load %arg10[%c0_26, %c16] : memref<8x32xbf16, #tpu.memory_space<vmem>>, vector<8x8xbf16>
    tpu.vector_store %arg10[%c0_26, %c16], %81 {strides = array<i32>} : memref<8x32xbf16, #tpu.memory_space<vmem>>, vector<8x8xbf16>,
    %83 = vector.extract_strided_slice %16 {offsets = [0, 24], sizes = [8, 8], strides = [1, 1]} : vector<8x96xbf16> to vector<8x8xbf16>
    %84 = vector.extract_strided_slice %16 {offsets = [0, 56], sizes = [8, 8], strides = [1, 1]} : vector<8x96xbf16> to vector<8x8xbf16>
    %85 = vector.extract_strided_slice %16 {offsets = [0, 88], sizes = [8, 8], strides = [1, 1]} : vector<8x96xbf16> to vector<8x8xbf16>
    %cst_27 = arith.constant dense<0.000000e+00> : vector<8x8xf32>
    %86 = tpu.matmul %83, %84, %cst_27 {dimension_numbers = #tpu.dot_dimension_numbers<[1], [1], [0], [0], [0, 0, 1, 0], [], []>} : vector<8x8xbf16>, vector<8x8xbf16>, vector<8x8xf32> -> vector<8x8xf32>
    %cst_28 = arith.constant 0.353553385 : f32
    %87 = vector.broadcast %cst_28 : f32 to vector<8x8xf32>
    %88 = arith.mulf %86, %87 : vector<8x8xf32>
    %89 = vector.broadcast %9 : vector<1x8xf32> to vector<8x8xf32>
    %90 = arith.addf %88, %89 : vector<8x8xf32>
    %cst_29 = arith.constant dense<0xFF800000> : vector<8xf32>
    %91 = vector.multi_reduction <maximumf>, %90, %cst_29 [1] : vector<8x8xf32> to vector<8xf32>
    %92 = vector.shape_cast %91 : vector<8xf32> to vector<8x1xf32>
    %93 = vector.broadcast %92 : vector<8x1xf32> to vector<8x8xf32>
    %94 = arith.subf %90, %93 : vector<8x8xf32>
    %95 = math.exp %94 : vector<8x8xf32>
    %cst_30 = arith.constant dense<0.000000e+00> : vector<8xf32>
    %96 = vector.multi_reduction <add>, %95, %cst_30 [1] : vector<8x8xf32> to vector<8xf32>
    %97 = vector.shape_cast %96 : vector<8xf32> to vector<8x1xf32>
    %98 = tpu.reciprocal %97 {approx = true} : vector<8x1xf32> -> vector<8x1xf32>
    %99 = vector.broadcast %98 : vector<8x1xf32> to vector<8x8xf32>
    %100 = arith.mulf %95, %99 : vector<8x8xf32>
    %101 = arith.truncf %100 : vector<8x8xf32> to vector<8x8xbf16>
    %cst_31 = arith.constant dense<0.000000e+00> : vector<8x8xf32>
    %102 = tpu.matmul %101, %85, %cst_31 {dimension_numbers = #tpu.dot_dimension_numbers<[1], [0], [0], [1], [0, 0, 1, 1], [], []>} : vector<8x8xbf16>, vector<8x8xbf16>, vector<8x8xf32> -> vector<8x8xf32>
    %103 = arith.truncf %102 : vector<8x8xf32> to vector<8x8xbf16>
    %c0_32 = arith.constant 0 : index
    %c24 = arith.constant 24 : index
    %104 = vector.load %arg10[%c0_32, %c24] : memref<8x32xbf16, #tpu.memory_space<vmem>>, vector<8x8xbf16>
    tpu.vector_store %arg10[%c0_32, %c24], %103 {strides = array<i32>} : memref<8x32xbf16, #tpu.memory_space<vmem>>, vector<8x8xbf16>,
    %c0_33 = arith.constant 0 : index
    %c0_34 = arith.constant 0 : index
    %105 = vector.load %arg10[%c0_33, %c0_34] : memref<8x32xbf16, #tpu.memory_space<vmem>>, vector<8x32xbf16>
    %c0_35 = arith.constant 0 : index
    %c0_36 = arith.constant 0 : index
    %106 = vector.load %arg5[%c0_35, %c0_36] : memref<32x32xbf16, #tpu.memory_space<vmem>>, vector<32x32xbf16>
    %cst_37 = arith.constant dense<0.000000e+00> : vector<8x32xf32>
    %107 = tpu.matmul %105, %106, %cst_37 {dimension_numbers = #tpu.dot_dimension_numbers<[1], [0], [0], [1], [0, 0, 1, 1], [], []>} : vector<8x32xbf16>, vector<32x32xbf16>, vector<8x32xf32> -> vector<8x32xf32>
    %c0_38 = arith.constant 0 : index
    %c0_39 = arith.constant 0 : index
    %108 = vector.load %arg6[%c0_38, %c0_39] : memref<1x32xf32, #tpu.memory_space<vmem>>, vector<1x32xf32>
    %109 = vector.broadcast %108 : vector<1x32xf32> to vector<8x32xf32>
    %110 = arith.addf %107, %109 : vector<8x32xf32>
    %111 = arith.addf %1, %110 : vector<8x32xf32>
    %cst_40 = arith.constant dense<0.000000e+00> : vector<8xf32>
    %112 = vector.multi_reduction <add>, %111, %cst_40 [1] : vector<8x32xf32> to vector<8xf32>
    %113 = vector.shape_cast %112 : vector<8xf32> to vector<8x1xf32>
    %cst_41 = arith.constant 3.200000e+01 : f32
    %114 = vector.broadcast %cst_41 : f32 to vector<8x1xf32>
    %115 = arith.divf %113, %114 : vector<8x1xf32>
    %116 = vector.broadcast %115 : vector<8x1xf32> to vector<8x32xf32>
    %117 = arith.subf %111, %116 : vector<8x32xf32>
    %118 = arith.mulf %117, %117 : vector<8x32xf32>
    %cst_42 = arith.constant dense<0.000000e+00> : vector<8xf32>
    %119 = vector.multi_reduction <add>, %118, %cst_42 [1] : vector<8x32xf32> to vector<8xf32>
    %120 = vector.shape_cast %119 : vector<8xf32> to vector<8x1xf32>
    %cst_43 = arith.constant 3.200000e+01 : f32
    %121 = vector.broadcast %cst_43 : f32 to vector<8x1xf32>
    %122 = arith.divf %120, %121 : vector<8x1xf32>
    %123 = vector.broadcast %115 : vector<8x1xf32> to vector<8x32xf32>
    %124 = arith.subf %111, %123 : vector<8x32xf32>
    %cst_44 = arith.constant 9.99999974E-6 : f32
    %125 = vector.broadcast %cst_44 : f32 to vector<8x1xf32>
    %126 = arith.addf %122, %125 : vector<8x1xf32>
    %127 = math.rsqrt %126 : vector<8x1xf32>
    %128 = vector.broadcast %127 : vector<8x1xf32> to vector<8x32xf32>
    %129 = arith.mulf %124, %128 : vector<8x32xf32>
    %c0_45 = arith.constant 0 : index
    %c0_46 = arith.constant 0 : index
    %130 = vector.load %arg7[%c0_45, %c0_46] : memref<1x32xf32, #tpu.memory_space<vmem>>, vector<1x32xf32>
    %131 = vector.broadcast %130 : vector<1x32xf32> to vector<8x32xf32>
    %132 = arith.mulf %129, %131 : vector<8x32xf32>
    %c0_47 = arith.constant 0 : index
    %c0_48 = arith.constant 0 : index
    %133 = vector.load %arg8[%c0_47, %c0_48] : memref<1x32xf32, #tpu.memory_space<vmem>>, vector<1x32xf32>
    %134 = vector.broadcast %133 : vector<1x32xf32> to vector<8x32xf32>
    %135 = arith.addf %132, %134 : vector<8x32xf32>
    %c0_49 = arith.constant 0 : index
    %c0_50 = arith.constant 0 : index
    %c0_51 = arith.constant 0 : index
    %136 = vector.load %arg9[%c0_49, %c0_50, %c0_51] : memref<1x8x32xf32, #tpu.memory_space<vmem>>, vector<1x8x32xf32>
    %137 = vector.shape_cast %136 : vector<1x8x32xf32> to vector<8x32xf32>
    %138 = vector.shape_cast %135 : vector<8x32xf32> to vector<1x8x32xf32>
    tpu.vector_store %arg9[%c0_49, %c0_50, %c0_51], %138 {strides = array<i32>} : memref<1x8x32xf32, #tpu.memory_space<vmem>>, vector<1x8x32xf32>,
    return
  }
  func.func @transform_0(%arg0: i32, %arg1: memref<2xi32, #tpu.memory_space<smem>>) -> (i32, i32, i32) {
    %c0_i32 = arith.constant 0 : i32
    %c0_i32_0 = arith.constant 0 : i32
    %c0_i32_1 = arith.constant 0 : i32
    return %arg0, %c0_i32, %c0_i32_0 : i32, i32, i32
  }
  func.func @transform_1(%arg0: i32, %arg1: memref<2xi32, #tpu.memory_space<smem>>) -> (i32, i32) {
    %c0_i32 = arith.constant 0 : i32
    %c0_i32_0 = arith.constant 0 : i32
    %c0_i32_1 = arith.constant 0 : i32
    return %c0_i32, %c0_i32_0 : i32, i32
  }
  func.func @transform_2(%arg0: i32, %arg1: memref<2xi32, #tpu.memory_space<smem>>) -> (i32, i32) {
    %c0_i32 = arith.constant 0 : i32
    %c0_i32_0 = arith.constant 0 : i32
    %c0_i32_1 = arith.constant 0 : i32
    return %c0_i32, %c0_i32_0 : i32, i32
  }
  func.func @transform_3(%arg0: i32, %arg1: memref<2xi32, #tpu.memory_space<smem>>) -> (i32, i32) {
    %c0_i32 = arith.constant 0 : i32
    %c0_i32_0 = arith.constant 0 : i32
    %c0_i32_1 = arith.constant 0 : i32
    return %c0_i32, %c0_i32_0 : i32, i32
  }
  func.func @transform_4(%arg0: i32, %arg1: memref<2xi32, #tpu.memory_space<smem>>) -> (i32, i32) {
    %c0_i32 = arith.constant 0 : i32
    %c0_i32_0 = arith.constant 0 : i32
    %c0_i32_1 = arith.constant 0 : i32
    return %c0_i32, %c0_i32_0 : i32, i32
  }
  func.func @transform_5(%arg0: i32, %arg1: memref<2xi32, #tpu.memory_space<smem>>) -> (i32, i32) {
    %c0_i32 = arith.constant 0 : i32
    %c0_i32_0 = arith.constant 0 : i32
    %c0_i32_1 = arith.constant 0 : i32
    return %c0_i32, %c0_i32_0 : i32, i32
  }
  func.func @transform_6(%arg0: i32, %arg1: memref<2xi32, #tpu.memory_space<smem>>) -> (i32, i32) {
    %c0_i32 = arith.constant 0 : i32
    %c0_i32_0 = arith.constant 0 : i32
    %c0_i32_1 = arith.constant 0 : i32
    return %c0_i32, %c0_i32_0 : i32, i32
  }
  func.func @transform_7(%arg0: i32, %arg1: memref<2xi32, #tpu.memory_space<smem>>) -> (i32, i32, i32) {
    %c0_i32 = arith.constant 0 : i32
    %c0_i32_0 = arith.constant 0 : i32
    %c0_i32_1 = arith.constant 0 : i32
    return %arg0, %c0_i32, %c0_i32_0 : i32, i32, i32
  }
}

module attributes {stable_mosaic.version = 11 : i64} {
  func.func @_linear_kernel(%arg0: i32, %arg1: memref<16x32xf32, #tpu.memory_space<vmem>>, %arg2: memref<32x32xbf16, #tpu.memory_space<vmem>>, %arg3: memref<1x32xf32, #tpu.memory_space<vmem>>, %arg4: memref<16x32xf32, #tpu.memory_space<vmem>>) attributes {dimension_semantics = [#tpu.dimension_semantics<parallel>], iteration_bounds = array<i64: 1>, scalar_prefetch = 0 : i64, scratch_operands = 0 : i64, tpu.core_type = #tpu.core_type<tc>, window_params = [{transform_indices = @transform_0, window_bounds = array<i64: 16, 32>}, {pipeline_mode = #tpu.pipeline_mode<synchronous>, transform_indices = @transform_1, window_bounds = array<i64: 32, 32>}, {pipeline_mode = #tpu.pipeline_mode<synchronous>, transform_indices = @transform_2, window_bounds = array<i64: 1, 32>}, {transform_indices = @transform_3, window_bounds = array<i64: 16, 32>}]} {
    %c0 = arith.constant 0 : index
    %c0_0 = arith.constant 0 : index
    %0 = vector.load %arg1[%c0, %c0_0] : memref<16x32xf32, #tpu.memory_space<vmem>>, vector<16x32xf32>
    %1 = arith.truncf %0 : vector<16x32xf32> to vector<16x32xbf16>
    %c0_1 = arith.constant 0 : index
    %c0_2 = arith.constant 0 : index
    %2 = vector.load %arg2[%c0_1, %c0_2] : memref<32x32xbf16, #tpu.memory_space<vmem>>, vector<32x32xbf16>
    %cst = arith.constant dense<0.000000e+00> : vector<16x32xf32>
    %3 = tpu.matmul %1, %2, %cst {dimension_numbers = #tpu.dot_dimension_numbers<[1], [0], [0], [1], [0, 0, 1, 1], [], []>} : vector<16x32xbf16>, vector<32x32xbf16>, vector<16x32xf32> -> vector<16x32xf32>
    %c0_3 = arith.constant 0 : index
    %c0_4 = arith.constant 0 : index
    %4 = vector.load %arg3[%c0_3, %c0_4] : memref<1x32xf32, #tpu.memory_space<vmem>>, vector<1x32xf32>
    %5 = vector.broadcast %4 : vector<1x32xf32> to vector<16x32xf32>
    %6 = arith.addf %3, %5 : vector<16x32xf32>
    %c0_5 = arith.constant 0 : index
    %c0_6 = arith.constant 0 : index
    %7 = vector.load %arg4[%c0_5, %c0_6] : memref<16x32xf32, #tpu.memory_space<vmem>>, vector<16x32xf32>
    tpu.vector_store %arg4[%c0_5, %c0_6], %6 {strides = array<i32>} : memref<16x32xf32, #tpu.memory_space<vmem>>, vector<16x32xf32>,
    return
  }
  func.func @transform_0(%arg0: i32) -> (i32, i32) {
    %c0_i32 = arith.constant 0 : i32
    %c0_i32_0 = arith.constant 0 : i32
    return %arg0, %c0_i32 : i32, i32
  }
  func.func @transform_1(%arg0: i32) -> (i32, i32) {
    %c0_i32 = arith.constant 0 : i32
    %c0_i32_0 = arith.constant 0 : i32
    %c0_i32_1 = arith.constant 0 : i32
    return %c0_i32, %c0_i32_0 : i32, i32
  }
  func.func @transform_2(%arg0: i32) -> (i32, i32) {
    %c0_i32 = arith.constant 0 : i32
    %c0_i32_0 = arith.constant 0 : i32
    %c0_i32_1 = arith.constant 0 : i32
    return %c0_i32, %c0_i32_0 : i32, i32
  }
  func.func @transform_3(%arg0: i32) -> (i32, i32) {
    %c0_i32 = arith.constant 0 : i32
    %c0_i32_0 = arith.constant 0 : i32
    return %arg0, %c0_i32 : i32, i32
  }
}

module attributes {stable_mosaic.version = 11 : i64} {
  func.func @_ffn_ln_kernel(%arg0: i32, %arg1: memref<16x32xf32, #tpu.memory_space<vmem>>, %arg2: memref<32x64xbf16, #tpu.memory_space<vmem>>, %arg3: memref<1x64xf32, #tpu.memory_space<vmem>>, %arg4: memref<64x32xbf16, #tpu.memory_space<vmem>>, %arg5: memref<1x32xf32, #tpu.memory_space<vmem>>, %arg6: memref<1x32xf32, #tpu.memory_space<vmem>>, %arg7: memref<1x32xf32, #tpu.memory_space<vmem>>, %arg8: memref<16x32xf32, #tpu.memory_space<vmem>>) attributes {dimension_semantics = [#tpu.dimension_semantics<parallel>], iteration_bounds = array<i64: 1>, scalar_prefetch = 0 : i64, scratch_operands = 0 : i64, tpu.core_type = #tpu.core_type<tc>, window_params = [{transform_indices = @transform_0, window_bounds = array<i64: 16, 32>}, {pipeline_mode = #tpu.pipeline_mode<synchronous>, transform_indices = @transform_1, window_bounds = array<i64: 32, 64>}, {pipeline_mode = #tpu.pipeline_mode<synchronous>, transform_indices = @transform_2, window_bounds = array<i64: 1, 64>}, {pipeline_mode = #tpu.pipeline_mode<synchronous>, transform_indices = @transform_3, window_bounds = array<i64: 64, 32>}, {pipeline_mode = #tpu.pipeline_mode<synchronous>, transform_indices = @transform_4, window_bounds = array<i64: 1, 32>}, {pipeline_mode = #tpu.pipeline_mode<synchronous>, transform_indices = @transform_5, window_bounds = array<i64: 1, 32>}, {pipeline_mode = #tpu.pipeline_mode<synchronous>, transform_indices = @transform_6, window_bounds = array<i64: 1, 32>}, {transform_indices = @transform_7, window_bounds = array<i64: 16, 32>}]} {
    %c0 = arith.constant 0 : index
    %c0_0 = arith.constant 0 : index
    %0 = vector.load %arg1[%c0, %c0_0] : memref<16x32xf32, #tpu.memory_space<vmem>>, vector<16x32xf32>
    %1 = arith.truncf %0 : vector<16x32xf32> to vector<16x32xbf16>
    %c0_1 = arith.constant 0 : index
    %c0_2 = arith.constant 0 : index
    %2 = vector.load %arg2[%c0_1, %c0_2] : memref<32x64xbf16, #tpu.memory_space<vmem>>, vector<32x64xbf16>
    %cst = arith.constant dense<0.000000e+00> : vector<16x64xf32>
    %3 = tpu.matmul %1, %2, %cst {dimension_numbers = #tpu.dot_dimension_numbers<[1], [0], [0], [1], [0, 0, 1, 1], [], []>} : vector<16x32xbf16>, vector<32x64xbf16>, vector<16x64xf32> -> vector<16x64xf32>
    %c0_3 = arith.constant 0 : index
    %c0_4 = arith.constant 0 : index
    %4 = vector.load %arg3[%c0_3, %c0_4] : memref<1x64xf32, #tpu.memory_space<vmem>>, vector<1x64xf32>
    %5 = vector.broadcast %4 : vector<1x64xf32> to vector<16x64xf32>
    %6 = arith.addf %3, %5 : vector<16x64xf32>
    %cst_5 = arith.constant 0.000000e+00 : f32
    %7 = vector.broadcast %cst_5 : f32 to vector<16x64xf32>
    %8 = arith.maximumf %6, %7 : vector<16x64xf32>
    %9 = arith.truncf %8 : vector<16x64xf32> to vector<16x64xbf16>
    %c0_6 = arith.constant 0 : index
    %c0_7 = arith.constant 0 : index
    %10 = vector.load %arg4[%c0_6, %c0_7] : memref<64x32xbf16, #tpu.memory_space<vmem>>, vector<64x32xbf16>
    %cst_8 = arith.constant dense<0.000000e+00> : vector<16x32xf32>
    %11 = tpu.matmul %9, %10, %cst_8 {dimension_numbers = #tpu.dot_dimension_numbers<[1], [0], [0], [1], [0, 0, 1, 1], [], []>} : vector<16x64xbf16>, vector<64x32xbf16>, vector<16x32xf32> -> vector<16x32xf32>
    %c0_9 = arith.constant 0 : index
    %c0_10 = arith.constant 0 : index
    %12 = vector.load %arg5[%c0_9, %c0_10] : memref<1x32xf32, #tpu.memory_space<vmem>>, vector<1x32xf32>
    %13 = vector.broadcast %12 : vector<1x32xf32> to vector<16x32xf32>
    %14 = arith.addf %11, %13 : vector<16x32xf32>
    %15 = arith.addf %0, %14 : vector<16x32xf32>
    %cst_11 = arith.constant dense<0.000000e+00> : vector<16xf32>
    %16 = vector.multi_reduction <add>, %15, %cst_11 [1] : vector<16x32xf32> to vector<16xf32>
    %17 = vector.shape_cast %16 : vector<16xf32> to vector<16x1xf32>
    %cst_12 = arith.constant 3.200000e+01 : f32
    %18 = vector.broadcast %cst_12 : f32 to vector<16x1xf32>
    %19 = arith.divf %17, %18 : vector<16x1xf32>
    %20 = vector.broadcast %19 : vector<16x1xf32> to vector<16x32xf32>
    %21 = arith.subf %15, %20 : vector<16x32xf32>
    %22 = arith.mulf %21, %21 : vector<16x32xf32>
    %cst_13 = arith.constant dense<0.000000e+00> : vector<16xf32>
    %23 = vector.multi_reduction <add>, %22, %cst_13 [1] : vector<16x32xf32> to vector<16xf32>
    %24 = vector.shape_cast %23 : vector<16xf32> to vector<16x1xf32>
    %cst_14 = arith.constant 3.200000e+01 : f32
    %25 = vector.broadcast %cst_14 : f32 to vector<16x1xf32>
    %26 = arith.divf %24, %25 : vector<16x1xf32>
    %27 = vector.broadcast %19 : vector<16x1xf32> to vector<16x32xf32>
    %28 = arith.subf %15, %27 : vector<16x32xf32>
    %cst_15 = arith.constant 9.99999974E-6 : f32
    %29 = vector.broadcast %cst_15 : f32 to vector<16x1xf32>
    %30 = arith.addf %26, %29 : vector<16x1xf32>
    %31 = math.rsqrt %30 : vector<16x1xf32>
    %32 = vector.broadcast %31 : vector<16x1xf32> to vector<16x32xf32>
    %33 = arith.mulf %28, %32 : vector<16x32xf32>
    %c0_16 = arith.constant 0 : index
    %c0_17 = arith.constant 0 : index
    %34 = vector.load %arg6[%c0_16, %c0_17] : memref<1x32xf32, #tpu.memory_space<vmem>>, vector<1x32xf32>
    %35 = vector.broadcast %34 : vector<1x32xf32> to vector<16x32xf32>
    %36 = arith.mulf %33, %35 : vector<16x32xf32>
    %c0_18 = arith.constant 0 : index
    %c0_19 = arith.constant 0 : index
    %37 = vector.load %arg7[%c0_18, %c0_19] : memref<1x32xf32, #tpu.memory_space<vmem>>, vector<1x32xf32>
    %38 = vector.broadcast %37 : vector<1x32xf32> to vector<16x32xf32>
    %39 = arith.addf %36, %38 : vector<16x32xf32>
    %c0_20 = arith.constant 0 : index
    %c0_21 = arith.constant 0 : index
    %40 = vector.load %arg8[%c0_20, %c0_21] : memref<16x32xf32, #tpu.memory_space<vmem>>, vector<16x32xf32>
    tpu.vector_store %arg8[%c0_20, %c0_21], %39 {strides = array<i32>} : memref<16x32xf32, #tpu.memory_space<vmem>>, vector<16x32xf32>,
    return
  }
  func.func @transform_0(%arg0: i32) -> (i32, i32) {
    %c0_i32 = arith.constant 0 : i32
    %c0_i32_0 = arith.constant 0 : i32
    return %arg0, %c0_i32 : i32, i32
  }
  func.func @transform_1(%arg0: i32) -> (i32, i32) {
    %c0_i32 = arith.constant 0 : i32
    %c0_i32_0 = arith.constant 0 : i32
    %c0_i32_1 = arith.constant 0 : i32
    return %c0_i32, %c0_i32_0 : i32, i32
  }
  func.func @transform_2(%arg0: i32) -> (i32, i32) {
    %c0_i32 = arith.constant 0 : i32
    %c0_i32_0 = arith.constant 0 : i32
    %c0_i32_1 = arith.constant 0 : i32
    return %c0_i32, %c0_i32_0 : i32, i32
  }
  func.func @transform_3(%arg0: i32) -> (i32, i32) {
    %c0_i32 = arith.constant 0 : i32
    %c0_i32_0 = arith.constant 0 : i32
    %c0_i32_1 = arith.constant 0 : i32
    return %c0_i32, %c0_i32_0 : i32, i32
  }
  func.func @transform_4(%arg0: i32) -> (i32, i32) {
    %c0_i32 = arith.constant 0 : i32
    %c0_i32_0 = arith.constant 0 : i32
    %c0_i32_1 = arith.constant 0 : i32
    return %c0_i32, %c0_i32_0 : i32, i32
  }
  func.func @transform_5(%arg0: i32) -> (i32, i32) {
    %c0_i32 = arith.constant 0 : i32
    %c0_i32_0 = arith.constant 0 : i32
    %c0_i32_1 = arith.constant 0 : i32
    return %c0_i32, %c0_i32_0 : i32, i32
  }
  func.func @transform_6(%arg0: i32) -> (i32, i32) {
    %c0_i32 = arith.constant 0 : i32
    %c0_i32_0 = arith.constant 0 : i32
    %c0_i32_1 = arith.constant 0 : i32
    return %c0_i32, %c0_i32_0 : i32, i32
  }
  func.func @transform_7(%arg0: i32) -> (i32, i32) {
    %c0_i32 = arith.constant 0 : i32
    %c0_i32_0 = arith.constant 0 : i32
    return %arg0, %c0_i32 : i32, i32
  }
}

module attributes {stable_mosaic.version = 11 : i64} {
  func.func @_tag_kernel(%arg0: i32, %arg1: memref<16x32xf32, #tpu.memory_space<vmem>>, %arg2: memref<32x128xbf16, #tpu.memory_space<vmem>>, %arg3: memref<1x128xf32, #tpu.memory_space<vmem>>, %arg4: memref<16x1xf32, #tpu.memory_space<vmem>>, %arg5: memref<16x1xi32, #tpu.memory_space<vmem>>, %arg6: memref<16x128xf32, #tpu.memory_space<vmem>>, %arg7: memref<1x1xf32, #tpu.memory_space<vmem>>, %arg8: memref<1x1xf32, #tpu.memory_space<vmem>>) attributes {dimension_semantics = [#tpu.dimension_semantics<parallel>], iteration_bounds = array<i64: 1>, scalar_prefetch = 0 : i64, scratch_operands = 0 : i64, tpu.core_type = #tpu.core_type<tc>, window_params = [{transform_indices = @transform_0, window_bounds = array<i64: 16, 32>}, {pipeline_mode = #tpu.pipeline_mode<synchronous>, transform_indices = @transform_1, window_bounds = array<i64: 32, 128>}, {pipeline_mode = #tpu.pipeline_mode<synchronous>, transform_indices = @transform_2, window_bounds = array<i64: 1, 128>}, {transform_indices = @transform_3, window_bounds = array<i64: 16, 1>}, {transform_indices = @transform_4, window_bounds = array<i64: 16, 1>}, {transform_indices = @transform_5, window_bounds = array<i64: 16, 128>}, {transform_indices = @transform_6, window_bounds = array<i64: 1, 1>}, {transform_indices = @transform_7, window_bounds = array<i64: 1, 1>}]} {
    %c0 = arith.constant 0 : index
    %c0_0 = arith.constant 0 : index
    %0 = vector.load %arg1[%c0, %c0_0] : memref<16x32xf32, #tpu.memory_space<vmem>>, vector<16x32xf32>
    %1 = arith.truncf %0 : vector<16x32xf32> to vector<16x32xbf16>
    %c0_1 = arith.constant 0 : index
    %c0_2 = arith.constant 0 : index
    %2 = vector.load %arg2[%c0_1, %c0_2] : memref<32x128xbf16, #tpu.memory_space<vmem>>, vector<32x128xbf16>
    %cst = arith.constant dense<0.000000e+00> : vector<16x128xf32>
    %3 = tpu.matmul %1, %2, %cst {dimension_numbers = #tpu.dot_dimension_numbers<[1], [0], [0], [1], [0, 0, 1, 1], [], []>} : vector<16x32xbf16>, vector<32x128xbf16>, vector<16x128xf32> -> vector<16x128xf32>
    %c0_3 = arith.constant 0 : index
    %c0_4 = arith.constant 0 : index
    %4 = vector.load %arg3[%c0_3, %c0_4] : memref<1x128xf32, #tpu.memory_space<vmem>>, vector<1x128xf32>
    %5 = vector.broadcast %4 : vector<1x128xf32> to vector<16x128xf32>
    %6 = arith.addf %3, %5 : vector<16x128xf32>
    %c0_5 = arith.constant 0 : index
    %c0_6 = arith.constant 0 : index
    %7 = vector.load %arg4[%c0_5, %c0_6] : memref<16x1xf32, #tpu.memory_space<vmem>>, vector<16x1xf32>
    %cst_7 = arith.constant 1.000000e+00 : f32
    %8 = vector.broadcast %cst_7 : f32 to vector<16x1xf32>
    %9 = arith.subf %8, %7 : vector<16x1xf32>
    %cst_8 = arith.constant -1.000000e+32 : f32
    %10 = vector.broadcast %cst_8 : f32 to vector<16x1xf32>
    %11 = arith.mulf %9, %10 : vector<16x1xf32>
    %12 = vector.broadcast %11 : vector<16x1xf32> to vector<16x128xf32>
    %13 = arith.addf %6, %12 : vector<16x128xf32>
    %14 = tpu.iota {dimensions = array<i32: 1>} : vector<16x128xi32>
    %c10_i32 = arith.constant 10 : i32
    %15 = vector.broadcast %c10_i32 : i32 to vector<16x128xi32>
    %16 = arith.cmpi slt, %14, %15 : vector<16x128xi32>
    %cst_9 = arith.constant -3.000000e+38 : f32
    %17 = vector.broadcast %cst_9 : f32 to vector<16x128xf32>
    %18 = arith.select %16, %13, %17 : vector<16x128xi1>, vector<16x128xf32>
    %cst_10 = arith.constant dense<0xFF800000> : vector<16xf32>
    %19 = vector.multi_reduction <maximumf>, %18, %cst_10 [1] : vector<16x128xf32> to vector<16xf32>
    %20 = vector.shape_cast %19 : vector<16xf32> to vector<16x1xf32>
    %21 = vector.broadcast %20 : vector<16x1xf32> to vector<16x128xf32>
    %22 = arith.subf %18, %21 : vector<16x128xf32>
    %23 = math.exp %22 : vector<16x128xf32>
    %cst_11 = arith.constant dense<0.000000e+00> : vector<16xf32>
    %24 = vector.multi_reduction <add>, %23, %cst_11 [1] : vector<16x128xf32> to vector<16xf32>
    %25 = vector.shape_cast %24 : vector<16xf32> to vector<16x1xf32>
    %26 = vector.broadcast %25 : vector<16x1xf32> to vector<16x128xf32>
    %27 = arith.divf %23, %26 : vector<16x128xf32>
    %c0_12 = arith.constant 0 : index
    %c0_13 = arith.constant 0 : index
    %28 = vector.load %arg6[%c0_12, %c0_13] : memref<16x128xf32, #tpu.memory_space<vmem>>, vector<16x128xf32>
    tpu.vector_store %arg6[%c0_12, %c0_13], %27 {strides = array<i32>} : memref<16x128xf32, #tpu.memory_space<vmem>>, vector<16x128xf32>,
    %29 = math.log %25 : vector<16x1xf32>
    %30 = arith.addf %20, %29 : vector<16x1xf32>
    %c0_14 = arith.constant 0 : index
    %c0_15 = arith.constant 0 : index
    %31 = vector.load %arg5[%c0_14, %c0_15] : memref<16x1xi32, #tpu.memory_space<vmem>>, vector<16x1xi32>
    %32 = vector.broadcast %31 : vector<16x1xi32> to vector<16x128xi32>
    %33 = arith.cmpi eq, %14, %32 : vector<16x128xi32>
    %cst_16 = arith.constant 0.000000e+00 : f32
    %34 = vector.broadcast %cst_16 : f32 to vector<16x128xf32>
    %35 = arith.select %33, %18, %34 : vector<16x128xi1>, vector<16x128xf32>
    %cst_17 = arith.constant dense<0.000000e+00> : vector<16xf32>
    %36 = vector.multi_reduction <add>, %35, %cst_17 [1] : vector<16x128xf32> to vector<16xf32>
    %37 = vector.shape_cast %36 : vector<16xf32> to vector<16x1xf32>
    %38 = tpu.iota {dimensions = array<i32: 0>} : vector<16x1xi32>
    %c16_i32 = arith.constant 16 : i32
    %39 = arith.muli %arg0, %c16_i32 : i32
    %40 = vector.broadcast %39 : i32 to vector<16x1xi32>
    %41 = arith.addi %38, %40 : vector<16x1xi32>
    %c0_i32 = arith.constant 0 : i32
    %42 = vector.broadcast %c0_i32 : i32 to vector<16x1xi32>
    %43 = arith.cmpi ne, %31, %42 : vector<16x1xi32>
    %c16_i32_18 = arith.constant 16 : i32
    %44 = vector.broadcast %c16_i32_18 : i32 to vector<16x1xi32>
    %45 = arith.cmpi slt, %41, %44 : vector<16x1xi32>
    %46 = arith.andi %43, %45 : vector<16x1xi1>
    %47 = arith.subf %30, %37 : vector<16x1xf32>
    %cst_19 = arith.constant 0.000000e+00 : f32
    %48 = vector.broadcast %cst_19 : f32 to vector<16x1xf32>
    %49 = arith.select %46, %47, %48 : vector<16x1xi1>, vector<16x1xf32>
    %50 = vector.shape_cast %49 : vector<16x1xf32> to vector<1x16x1xf32>
    %cst_20 = arith.constant dense<0.000000e+00> : vector<1xf32>
    %51 = vector.multi_reduction <add>, %50, %cst_20 [1, 2] : vector<1x16x1xf32> to vector<1xf32>
    %52 = vector.shape_cast %51 : vector<1xf32> to vector<1x1x1xf32>
    %53 = vector.extract %52[0, 0, 0] : f32 from vector<1x1x1xf32>
    %54 = vector.broadcast %53 : f32 to vector<1x1xf32>
    %c0_21 = arith.constant 0 : index
    %c0_22 = arith.constant 0 : index
    %55 = vector.load %arg7[%c0_21, %c0_22] : memref<1x1xf32, #tpu.memory_space<vmem>>, vector<1x1xf32>
    tpu.vector_store %arg7[%c0_21, %c0_22], %54 {strides = array<i32>} : memref<1x1xf32, #tpu.memory_space<vmem>>, vector<1x1xf32>,
    %56 = arith.extui %46 : vector<16x1xi1> to vector<16x1xi32>
    %57 = arith.sitofp %56 : vector<16x1xi32> to vector<16x1xf32>
    %58 = vector.shape_cast %57 : vector<16x1xf32> to vector<1x16x1xf32>
    %cst_23 = arith.constant dense<0.000000e+00> : vector<1xf32>
    %59 = vector.multi_reduction <add>, %58, %cst_23 [1, 2] : vector<1x16x1xf32> to vector<1xf32>
    %60 = vector.shape_cast %59 : vector<1xf32> to vector<1x1x1xf32>
    %61 = vector.extract %60[0, 0, 0] : f32 from vector<1x1x1xf32>
    %62 = vector.broadcast %61 : f32 to vector<1x1xf32>
    %c0_24 = arith.constant 0 : index
    %c0_25 = arith.constant 0 : index
    %63 = vector.load %arg8[%c0_24, %c0_25] : memref<1x1xf32, #tpu.memory_space<vmem>>, vector<1x1xf32>
    tpu.vector_store %arg8[%c0_24, %c0_25], %62 {strides = array<i32>} : memref<1x1xf32, #tpu.memory_space<vmem>>, vector<1x1xf32>,
    return
  }
  func.func @transform_0(%arg0: i32) -> (i32, i32) {
    %c0_i32 = arith.constant 0 : i32
    %c0_i32_0 = arith.constant 0 : i32
    return %arg0, %c0_i32 : i32, i32
  }
  func.func @transform_1(%arg0: i32) -> (i32, i32) {
    %c0_i32 = arith.constant 0 : i32
    %c0_i32_0 = arith.constant 0 : i32
    %c0_i32_1 = arith.constant 0 : i32
    return %c0_i32, %c0_i32_0 : i32, i32
  }
  func.func @transform_2(%arg0: i32) -> (i32, i32) {
    %c0_i32 = arith.constant 0 : i32
    %c0_i32_0 = arith.constant 0 : i32
    %c0_i32_1 = arith.constant 0 : i32
    return %c0_i32, %c0_i32_0 : i32, i32
  }
  func.func @transform_3(%arg0: i32) -> (i32, i32) {
    %c0_i32 = arith.constant 0 : i32
    %c0_i32_0 = arith.constant 0 : i32
    return %arg0, %c0_i32 : i32, i32
  }
  func.func @transform_4(%arg0: i32) -> (i32, i32) {
    %c0_i32 = arith.constant 0 : i32
    %c0_i32_0 = arith.constant 0 : i32
    return %arg0, %c0_i32 : i32, i32
  }
  func.func @transform_5(%arg0: i32) -> (i32, i32) {
    %c0_i32 = arith.constant 0 : i32
    %c0_i32_0 = arith.constant 0 : i32
    return %arg0, %c0_i32 : i32, i32
  }
  func.func @transform_6(%arg0: i32) -> (i32, i32) {
    %c0_i32 = arith.constant 0 : i32
    %c0_i32_0 = arith.constant 0 : i32
    return %arg0, %c0_i32 : i32, i32
  }
  func.func @transform_7(%arg0: i32) -> (i32, i32) {
    %c0_i32 = arith.constant 0 : i32
    %c0_i32_0 = arith.constant 0 : i32
    return %arg0, %c0_i32 : i32, i32
  }
}

</mosaic_0001>

<bundles_post_ra>
// kernel: transformer_crf_forward.10
= control target key start
LH: loop header
LB: loop body
LE: loop exit
PB: predicated region body
PF: predicated region fallthrough
CT: control target
= control target key end

     0   :  { %8 = vsyncpa [#allocation3], 0  ;;  %s351_s0 = inlined_call_operand.hbm [shape: f32[16,32], index: 0, kind: input, shape index: {}]   ;;  %s352_s1 = inlined_call_operand.hbm [shape: bf16[32,32], index: 1, kind: input, shape index: {}]   ;;  %s353_s2 = inlined_call_operand.hbm [shape: f32[1,32], index: 2, kind: input, shape index: {}]   ;;  %s354_s3 = inlined_call_operand.hbm [shape: f32[16,32], index: 3, kind: output, shape index: {}]  }
   0x1   :  { %9 = vsyncpa [#allocation6], 0 }
   0x2   :  { %10 = vsyncpa [#allocation4], 0  ;;  %s267_s12 = smov [#allocation5]   ;;  %s173_s16 = scalar_lea.hbm %s352_s1, 256 }
   0x3   :  { %s28_s13 = sshll.u32 %s267_s12, 4  ;;  %p174_p0 = scmp.ne.s32.totalorder %s352_s1, %s173_s16  ;;  %s29_s13 = int_to_ptr.vmem [resolvable:$true] %s28_s13 }
   0x4   :  { %p177_p1 = scmp.lt.u32.totalorder %s173_s16, %s352_s1 }
   0x6   :  { %p179_p2 = pnand %p177_p1, %p174_p0 }
   0x8   :  { %182 = shalt.err (!%p179_p2)
}
   0x9   :  { %s183_s21 = scalar_lea.vmem %s29_s13, 256  ;;  %p188_p4 = scmp.lt.s32.totalorder %s29_s13, %s29_s13 }
   0xa   :  { %p184_p3 = scmp.ne.s32.totalorder %s29_s13, %s183_s21  ;;  %p189_p5 = scmp.lt.s32.totalorder %s183_s21, %s183_s21 }
   0xc   :  { %p190_p6 = por %p189_p5, %p188_p4 }
   0xe   :  { %p191_p7 = pnand %p190_p6, %p184_p3 }
  0x10   :  { %194 = shalt.err (!%p191_p7)
}
  0x11   :  { %s268_s22 = smov 64   ;;  %s269_s23 = smov 4  }
  0x12   :  { %34 = dma.hbm_to_vmem [thread:$0]  %s352_s1, 256, %s29_s13, [#allocation6], %s268_s22, %s268_s22, %s269_s23  }
  0x13   :  { %s270_s26 = smov [#allocation2]   ;;  %s195_s30 = scalar_lea.hbm %s351_s0, 256 }
  0x14   :  { %s16_s27 = sshll.u32 %s270_s26, 4  ;;  %p196_p8 = scmp.ne.s32.totalorder %s351_s0, %s195_s30  ;;  %s17_s27 = int_to_ptr.vmem [resolvable:$true] %s16_s27 }
  0x15   :  { %p199_p9 = scmp.lt.u32.totalorder %s195_s30, %s351_s0 }
  0x17   :  { %p201_p10 = pnand %p199_p9, %p196_p8 }
  0x19   :  { %204 = shalt.err (!%p201_p10)
}
  0x1a   :  { %s205_s8 = scalar_lea.vmem %s17_s27, 256  ;;  %p210_p12 = scmp.lt.s32.totalorder %s17_s27, %s17_s27 }
  0x1b   :  { %p206_p11 = scmp.ne.s32.totalorder %s17_s27, %s205_s8  ;;  %p211_p13 = scmp.lt.s32.totalorder %s205_s8, %s205_s8 }
  0x1d   :  { %p212_p0 = por %p211_p13, %p210_p12 }
  0x1f   :  { %p213_p1 = pnand %p212_p0, %p206_p11 }
  0x21   :  { %216 = shalt.err (!%p213_p1)
}
  0x22   :  { %s271_s1 = smov 128   ;;  %s272_s9 = smov 8  }
  0x23   :  { %22 = dma.hbm_to_vmem [thread:$0]  %s351_s0, 256, %s17_s27, [#allocation3], %s271_s1, %s271_s1, %s272_s9  }
  0x24   :  { %s273_s12 = smov [#allocation7]   ;;  %s217_s16 = scalar_lea.hbm %s353_s2, 16 }
  0x25   :  { %s41_s13 = sshll.u32 %s273_s12, 4  ;;  %p218_p2 = scmp.ne.s32.totalorder %s353_s2, %s217_s16  ;;  %s42_s13 = int_to_ptr.vmem [resolvable:$true] %s41_s13 }
  0x26   :  { %p221_p3 = scmp.lt.u32.totalorder %s217_s16, %s353_s2 }
  0x28   :  { %p223_p4 = pnand %p221_p3, %p218_p2 }
  0x2a   :  { %226 = shalt.err (!%p223_p4)
}
  0x2b   :  { %s227_s21 = scalar_lea.vmem %s42_s13, 16  ;;  %s231_s0 = scalar_lea.vmem %s42_s13, 32 }
  0x2c   :  { %p228_p5 = scmp.ne.s32.totalorder %s42_s13, %s227_s21  ;;  %p232_p6 = scmp.lt.s32.totalorder %s42_s13, %s42_s13 }
  0x2d   :  { %p233_p7 = scmp.lt.s32.totalorder %s231_s0, %s227_s21 }
  0x2f   :  { %p234_p8 = por %p233_p7, %p232_p6 }
  0x31   :  { %p235_p9 = pnand %p234_p8, %p228_p5 }
  0x33   :  { %238 = shalt.err (!%p235_p9)
}
  0x34   :  { %44 = dma.hbm_to_vmem [thread:$0]  %s353_s2, 16, %s42_s13, [#allocation6]  }
  0x35   :  { %261 = dma.done.wait [#allocation3], 256  }
  0x36   :  { %262 = vsyncadd [#allocation3], 4294967040 }
  0x37   :  { %263 = dma.done.wait [#allocation6], 272  }
  0x38   :  { %264 = vsyncadd [#allocation6], 4294967024  ;;  %v274_v0 = vmov 0.0   ;;  %vm275_vm0 = vmmov 0   ;;  %v171_v1 = vld [vmem:[#allocation5] sm:$0xff]   ;;  %v172_v2 = vld [vmem:[#allocation5 + $0x8] sm:$0xff]  }
  0x39   :  { %153 = vmatprep.subr.bf16.mxu0 %v274_v0  ;;  %157 = vmatprep.mubr.msk.bf16.mxu0 %vm275_vm0, %v274_v0  ;;  %v55_v3 = vld [vmem:[#allocation2] sm:$0xff]  ;;  %v56_v4 = vld [vmem:[#allocation2 + $0x8] sm:$0xff]  ;;  %vm81_vm1 = vcmask 261120   ;;  %s276_s2 = smov [#allocation8]  }
  0x3a   :  { %154 = vmatpush3.bf16.msra.mxu0 %v171_v1  ;;  %v57_v5 = vpack.c.bf16 %v56_v4, %v55_v3  ;;  %v146_v6 = vld [vmem:[#allocation7] ss:$0 sm:$0xff]  ;;  %s133_s24 = sshll.u32 %s276_s2, 4  ;;  %s134_s24 = int_to_ptr.vmem [resolvable:$true] %s133_s24 }
  0x3b   :  { %155 = vmatprep.subr.bf16.mxu0 %v274_v0  ;;  %s239_s25 = scalar_lea.vmem %s134_s24, 256  ;;  %p244_p11 = scmp.lt.s32.totalorder %s134_s24, %s134_s24 }
  0x3c   :  { %p240_p10 = scmp.ne.s32.totalorder %s134_s24, %s239_s25  ;;  %p245_p12 = scmp.lt.s32.totalorder %s239_s25, %s239_s25 }
  0x3e   :  { %156 = vmatpush3.bf16.msra.mxu0 %v172_v2  ;;  %p246_p13 = por %p245_p12, %p244_p11 }
  0x40   :  { %p247_p0 = pnand %p246_p13, %p240_p10 }
  0x41   :  { %158 = vmatmul.mubr.msk.bf16.vlgmr.msra.gmra.mrb[0].mxu0 %vm81_vm1, %v57_v5 }
 0x114   :  { %v119_v7 = vpop.f32.mrb[0].mxu0 }
 0x115   :  { %v120_v8 = vadd.f32 %v146_v6, %v119_v7  ;;  %v159_v9 = vpop.f32.mrb[1].mxu0 }
 0x116   :  { %v122_v10 = vpop.f32.mrb[2].mxu0 }
 0x117   :  { %126 = vst.msk [vmem:[#allocation8] sm:$0xff] %vm81_vm1, %v120_v8  ;;  %v123_v11 = vadd.f32 %v146_v6, %v122_v10  ;;  %v160_v12 = vpop.f32.mrb[3].mxu0 }
 0x119   :  { %127 = vst.msk [vmem:[#allocation8 + $0x8] sm:$0xff] %vm81_vm1, %v123_v11 }
 0x11a   :  { %250 = shalt.err (!%p247_p0)
}
 0x11b   :  { %s251_s28 = scalar_lea.hbm %s354_s3, 256 }
 0x11c   :  { %p252_p1 = scmp.ne.s32.totalorder %s354_s3, %s251_s28  ;;  %p255_p2 = scmp.lt.u32.totalorder %s251_s28, %s354_s3 }
 0x11e   :  { %p257_p3 = pnand %p255_p2, %p252_p1 }
 0x120   :  { %260 = shalt.err (!%p257_p3)
}
 0x121   :  { %139 = dma.vmem_to_hbm [thread:$0]  %s134_s24, 256, %s354_s3, [#allocation4], %s271_s1, %s271_s1, %s272_s9  }
 0x122   :  { %265 = dma.done.wait [#allocation4], 256  }
 0x123   :  { %266 = vsyncadd [#allocation4], 4294967040 }
 0x124   :  { %143 = vsyncpa [#allocation3], 1 }
 0x125   :  { %144 = vsyncpa [#allocation6], 1 }
 0x126   :  { %145 = vsyncpa [#allocation4], 1 }

// kernel: transformer_crf_forward.12
= control target key start
LH: loop header
LB: loop body
LE: loop exit
PB: predicated region body
PF: predicated region fallthrough
CT: control target
= control target key end

     0   :  { %12 = vsyncpa [#allocation3], 0  ;;  %s755_s0 = inlined_call_operand.hbm [shape: f32[16,32], index: 0, kind: input, shape index: {}]   ;;  %s756_s1 = inlined_call_operand.hbm [shape: bf16[32,64], index: 1, kind: input, shape index: {}]   ;;  %s757_s2 = inlined_call_operand.hbm [shape: f32[1,64], index: 2, kind: input, shape index: {}]   ;;  %s758_s3 = inlined_call_operand.hbm [shape: bf16[64,32], index: 3, kind: input, shape index: {}]   ;;  %s759_s4 = inlined_call_operand.hbm [shape: f32[1,32], index: 4, kind: input, shape index: {}]   ;;  %s760_s5 = inlined_call_operand.hbm [shape: f32[1,32], index: 5, kind: input, shape index: {}]   ;;  %s761_s6 = inlined_call_operand.hbm [shape: f32[1,32], index: 6, kind: input, shape index: {}]   ;;  %s762_s7 = inlined_call_operand.hbm [shape: f32[16,32], index: 7, kind: output, shape index: {}]  }
   0x1   :  { %13 = vsyncpa [#allocation6], 0 }
   0x2   :  { %14 = vsyncpa [#allocation9], 0 }
   0x3   :  { %15 = vsyncpa [#allocation12], 0 }
   0x4   :  { %16 = vsyncpa [#allocation4], 0  ;;  %s592_s24 = smov [#allocation5]   ;;  %s406_s28 = scalar_lea.hbm %s756_s1, 256 }
   0x5   :  { %s34_s25 = sshll.u32 %s592_s24, 4  ;;  %p407_p0 = scmp.ne.s32.totalorder %s756_s1, %s406_s28  ;;  %s35_s25 = int_to_ptr.vmem [resolvable:$true] %s34_s25 }
   0x6   :  { %p410_p1 = scmp.lt.u32.totalorder %s406_s28, %s756_s1 }
   0x8   :  { %p412_p2 = pnand %p410_p1, %p407_p0 }
   0xa   :  { %415 = shalt.err (!%p412_p2)
}
   0xb   :  { %s416_s10 = scalar_lea.vmem %s35_s25, 256  ;;  %p421_p4 = scmp.lt.s32.totalorder %s35_s25, %s35_s25 }
   0xc   :  { %p417_p3 = scmp.ne.s32.totalorder %s35_s25, %s416_s10  ;;  %p422_p5 = scmp.lt.s32.totalorder %s416_s10, %s416_s10 }
   0xe   :  { %p423_p6 = por %p422_p5, %p421_p4 }
  0x10   :  { %p424_p7 = pnand %p423_p6, %p417_p3 }
  0x12   :  { %427 = shalt.err (!%p424_p7)
}
  0x13   :  { %s593_s11 = smov 64   ;;  %s594_s12 = smov 4  }
  0x14   :  { %40 = dma.hbm_to_vmem [thread:$0]  %s756_s1, 256, %s35_s25, [#allocation6], %s593_s11, %s593_s11, %s594_s12  }
  0x15   :  { %s595_s15 = smov [#allocation8]   ;;  %s596_s17 = smov [#allocation11]  }
  0x16   :  { %s56_s16 = sshll.u32 %s595_s15, 4  ;;  %s79_s18 = sshll.u32 %s596_s17, 4  ;;  %s57_s16 = int_to_ptr.vmem [resolvable:$true] %s56_s16  ;;  %s80_s18 = int_to_ptr.vmem [resolvable:$true] %s79_s18 }
  0x17   :  { %s428_s21 = scalar_lea.hbm %s758_s3, 512 }
  0x18   :  { %p429_p8 = scmp.ne.s32.totalorder %s758_s3, %s428_s21  ;;  %p432_p9 = scmp.lt.u32.totalorder %s428_s21, %s758_s3 }
  0x1a   :  { %p434_p10 = pnand %p432_p9, %p429_p8 }
  0x1c   :  { %437 = shalt.err (!%p434_p10)
}
  0x1d   :  { %s438_s1 = scalar_lea.vmem %s57_s16, 512  ;;  %p443_p12 = scmp.lt.s32.totalorder %s57_s16, %s57_s16 }
  0x1e   :  { %p439_p11 = scmp.ne.s32.totalorder %s57_s16, %s438_s1  ;;  %p444_p13 = scmp.lt.s32.totalorder %s438_s1, %s438_s1 }
  0x20   :  { %p445_p0 = por %p444_p13, %p443_p12 }
  0x22   :  { %p446_p1 = pnand %p445_p0, %p439_p11 }
  0x24   :  { %449 = shalt.err (!%p446_p1)
}
  0x25   :  { %62 = dma.hbm_to_vmem [thread:$0]  %s758_s3, 512, %s57_s16, [#allocation9], %s593_s11, %s593_s11, %s594_s12  }
  0x26   :  { %s450_s30 = scalar_lea.hbm %s760_s5, 16 }
  0x27   :  { %p451_p2 = scmp.ne.s32.totalorder %s760_s5, %s450_s30  ;;  %p454_p3 = scmp.lt.u32.totalorder %s450_s30, %s760_s5 }
  0x29   :  { %p456_p4 = pnand %p454_p3, %p451_p2 }
  0x2b   :  { %459 = shalt.err (!%p456_p4)
}
  0x2c   :  { %s460_s14 = scalar_lea.vmem %s80_s18, 16  ;;  %s464_s15 = scalar_lea.vmem %s80_s18, 32 }
  0x2d   :  { %p461_p5 = scmp.ne.s32.totalorder %s80_s18, %s460_s14  ;;  %p465_p6 = scmp.lt.s32.totalorder %s80_s18, %s80_s18 }
  0x2e   :  { %p466_p7 = scmp.lt.s32.totalorder %s464_s15, %s460_s14 }
  0x30   :  { %p467_p8 = por %p466_p7, %p465_p6 }
  0x32   :  { %p468_p9 = pnand %p467_p8, %p461_p5 }
  0x34   :  { %471 = shalt.err (!%p468_p9)
}
  0x35   :  { %82 = dma.hbm_to_vmem [thread:$0]  %s760_s5, 16, %s80_s18, [#allocation12]  }
  0x36   :  { %s597_s12 = smov [#allocation2]   ;;  %s472_s20 = scalar_lea.hbm %s755_s0, 256 }
  0x37   :  { %s22_s16 = sshll.u32 %s597_s12, 4  ;;  %p473_p10 = scmp.ne.s32.totalorder %s755_s0, %s472_s20  ;;  %s23_s16 = int_to_ptr.vmem [resolvable:$true] %s22_s16 }
  0x38   :  { %p476_p11 = scmp.lt.u32.totalorder %s472_s20, %s755_s0 }
  0x3a   :  { %p478_p12 = pnand %p476_p11, %p473_p10 }
  0x3c   :  { %481 = shalt.err (!%p478_p12)
}
  0x3d   :  { %s482_s26 = scalar_lea.vmem %s23_s16, 256  ;;  %p487_p0 = scmp.lt.s32.totalorder %s23_s16, %s23_s16 }
  0x3e   :  { %p483_p13 = scmp.ne.s32.totalorder %s23_s16, %s482_s26  ;;  %p488_p1 = scmp.lt.s32.totalorder %s482_s26, %s482_s26 }
  0x40   :  { %p489_p2 = por %p488_p1, %p487_p0 }
  0x42   :  { %p490_p3 = pnand %p489_p2, %p483_p13 }
  0x44   :  { %493 = shalt.err (!%p490_p3)
}
  0x45   :  { %s598_s5 = smov 128   ;;  %s599_s18 = smov 8  }
  0x46   :  { %28 = dma.hbm_to_vmem [thread:$0]  %s755_s0, 256, %s23_s16, [#allocation3], %s598_s5, %s598_s5, %s599_s18  }
  0x47   :  { %s600_s27 = smov [#allocation7]   ;;  %s601_s29 = smov [#allocation10]  }
  0x48   :  { %s47_s28 = sshll.u32 %s600_s27, 4  ;;  %s69_s30 = sshll.u32 %s601_s29, 4  ;;  %s48_s28 = int_to_ptr.vmem [resolvable:$true] %s47_s28  ;;  %s70_s30 = int_to_ptr.vmem [resolvable:$true] %s69_s30 }
  0x49   :  { %s494_s10 = scalar_lea.hbm %s757_s2, 16 }
  0x4a   :  { %p495_p4 = scmp.ne.s32.totalorder %s757_s2, %s494_s10  ;;  %p498_p5 = scmp.lt.u32.totalorder %s494_s10, %s757_s2 }
  0x4c   :  { %p500_p6 = pnand %p498_p5, %p495_p4 }
  0x4e   :  { %503 = shalt.err (!%p500_p6)
}
  0x4f   :  { %s504_s0 = scalar_lea.vmem %s48_s28, 16  ;;  %s508_s11 = scalar_lea.vmem %s48_s28, 32 }
  0x50   :  { %p505_p7 = scmp.ne.s32.totalorder %s48_s28, %s504_s0  ;;  %p509_p8 = scmp.lt.s32.totalorder %s48_s28, %s48_s28 }
  0x51   :  { %p510_p9 = scmp.lt.s32.totalorder %s508_s11, %s504_s0 }
  0x53   :  { %p511_p10 = por %p510_p9, %p509_p8 }
  0x55   :  { %p512_p11 = pnand %p511_p10, %p505_p7 }
  0x57   :  { %515 = shalt.err (!%p512_p11)
}
  0x58   :  { %50 = dma.hbm_to_vmem [thread:$0]  %s757_s2, 16, %s48_s28, [#allocation6]  }
  0x59   :  { %s516_s20 = scalar_lea.hbm %s759_s4, 16 }
  0x5a   :  { %p517_p12 = scmp.ne.s32.totalorder %s759_s4, %s516_s20  ;;  %p520_p13 = scmp.lt.u32.totalorder %s516_s20, %s759_s4 }
  0x5c   :  { %p522_p0 = pnand %p520_p13, %p517_p12 }
  0x5e   :  { %525 = shalt.err (!%p522_p0)
}
  0x5f   :  { %s526_s26 = scalar_lea.vmem %s70_s30, 16  ;;  %s530_s1 = scalar_lea.vmem %s70_s30, 32 }
  0x60   :  { %p527_p1 = scmp.ne.s32.totalorder %s70_s30, %s526_s26  ;;  %p531_p2 = scmp.lt.s32.totalorder %s70_s30, %s70_s30 }
  0x61   :  { %p532_p3 = scmp.lt.s32.totalorder %s530_s1, %s526_s26 }
  0x63   :  { %p533_p4 = por %p532_p3, %p531_p2 }
  0x65   :  { %p534_p5 = pnand %p533_p4, %p527_p1 }
  0x67   :  { %537 = shalt.err (!%p534_p5)
}
  0x68   :  { %72 = dma.hbm_to_vmem [thread:$0]  %s759_s4, 16, %s70_s30, [#allocation9]  }
  0x69   :  { %s602_s27 = smov [#allocation13]   ;;  %s538_s9 = scalar_lea.hbm %s761_s6, 16 }
  0x6a   :  { %s89_s28 = sshll.u32 %s602_s27, 4  ;;  %p539_p6 = scmp.ne.s32.totalorder %s761_s6, %s538_s9  ;;  %s90_s28 = int_to_ptr.vmem [resolvable:$true] %s89_s28 }
  0x6b   :  { %p542_p7 = scmp.lt.u32.totalorder %s538_s9, %s761_s6 }
  0x6d   :  { %p544_p8 = pnand %p542_p7, %p539_p6 }
  0x6f   :  { %547 = shalt.err (!%p544_p8)
}
  0x70   :  { %s548_s3 = scalar_lea.vmem %s90_s28, 16  ;;  %s552_s4 = scalar_lea.vmem %s90_s28, 32 }
  0x71   :  { %p549_p9 = scmp.ne.s32.totalorder %s90_s28, %s548_s3  ;;  %p553_p10 = scmp.lt.s32.totalorder %s90_s28, %s90_s28 }
  0x72   :  { %p554_p11 = scmp.lt.s32.totalorder %s552_s4, %s548_s3 }
  0x74   :  { %p555_p12 = por %p554_p11, %p553_p10 }
  0x76   :  { %p556_p13 = pnand %p555_p12, %p549_p9 }
  0x78   :  { %559 = shalt.err (!%p556_p13)
}
  0x79   :  { %92 = dma.hbm_to_vmem [thread:$0]  %s761_s6, 16, %s90_s28, [#allocation12]  }
  0x7a   :  { %582 = dma.done.wait [#allocation3], 256  }
  0x7b   :  { %583 = vsyncadd [#allocation3], 4294967040 }
  0x7c   :  { %584 = dma.done.wait [#allocation6], 272  }
  0x7d   :  { %585 = vsyncadd [#allocation6], 4294967024 }
  0x7e   :  { %586 = dma.done.wait [#allocation9], 528  }
  0x7f   :  { %587 = vsyncadd [#allocation9], 4294966768 }
  0x80   :  { %588 = dma.done.wait [#allocation12], 32  }
  0x81   :  { %589 = vsyncadd [#allocation12], 4294967264  ;;  %v603_v0 = vmov 0.0   ;;  %vm604_vm0 = vmmov 0   ;;  %v396_v1 = vld [vmem:[#allocation5] sm:$0xff]   ;;  %v397_v2 = vld [vmem:[#allocation5 + $0x8] sm:$0xff]  }
  0x82   :  { %362 = vmatprep.subr.bf16.mxu0 %v603_v0  ;;  %366 = vmatprep.mubr.msk.bf16.mxu0 %vm604_vm0, %v603_v0  ;;  %v115_v3 = vld [vmem:[#allocation2] sm:$0xff]  ;;  %v116_v4 = vld [vmem:[#allocation2 + $0x8] sm:$0xff]  ;;  %vm141_vm1 = vcmask 261120   ;;  %v400_v8 = vld [vmem:[#allocation8 + $0x10] sm:$0xff]   ;;  %vm228_vm2 = vcmask 523264   ;;  %s605_s6 = smov [#allocation14]  }
  0x83   :  { %370 = vmatprep.subr.bf16.mxu1 %v603_v0  ;;  %378 = vmatprep.mubr.msk.bf16.mxu1 %vm604_vm0, %v603_v0  ;;  %v398_v5 = vld [vmem:[#allocation8] sm:$0xff]   ;;  %v399_v6 = vld [vmem:[#allocation8 + $0x8] sm:$0xff]   ;;  %v117_v7 = vpack.c.bf16 %v116_v4, %v115_v3  ;;  %v401_v9 = vld [vmem:[#allocation8 + $0x18] sm:$0xff]   ;;  %s327_s11 = sshll.u32 %s605_s6, 4  ;;  %s328_s11 = int_to_ptr.vmem [resolvable:$true] %s327_s11 }
  0x84   :  { %363 = vmatpush3.bf16.msra.mxu0 %v396_v1  ;;  %371 = vmatpush3.bf16.msra.mxu1 %v398_v5  ;;  %v342_v10 = vld [vmem:[#allocation7] ss:$0 sm:$0xff]  ;;  %v346_v20 = vld [vmem:[#allocation10] ss:$0 sm:$0xff]  ;;  %v352_v48 = vld [vmem:[#allocation11] ss:$0 sm:$0xff]  ;;  %p565_p1 = scmp.lt.s32.totalorder %s328_s11, %s328_s11 }
  0x85   :  { %364 = vmatprep.subr.bf16.mxu0 %v603_v0  ;;  %372 = vmatprep.subr.bf16.mxu1 %v603_v0  ;;  %v353_v50 = vld [vmem:[#allocation13] ss:$0 sm:$0xff]  ;;  %s560_s12 = scalar_lea.vmem %s328_s11, 256 }
  0x86   :  { %p561_p0 = scmp.ne.s32.totalorder %s328_s11, %s560_s12  ;;  %p566_p2 = scmp.lt.s32.totalorder %s560_s12, %s560_s12 }
  0x88   :  { %365 = vmatpush3.bf16.msra.mxu0 %v397_v2  ;;  %373 = vmatpush3.bf16.msra.mxu1 %v399_v6  ;;  %p567_p3 = por %p566_p2, %p565_p1 }
  0x89   :  { %374 = vmatprep.subr.bf16.mxu1 %v603_v0 }
  0x8a   :  { %p568_p4 = pnand %p567_p3, %p561_p0 }
  0x8b   :  { %367 = vmatmul.mubr.msk.bf16.vlgmr.msra.gmra.mrb[0].mxu0 %vm141_vm1, %v117_v7 }
  0x8c   :  { %375 = vmatpush3.bf16.msra.mxu1 %v400_v8 }
  0x8d   :  { %376 = vmatprep.subr.bf16.mxu1 %v603_v0 }
  0x90   :  { %377 = vmatpush3.bf16.msra.mxu1 %v401_v9 }
 0x15e   :  { %v179_v11 = vpop.f32.mrb[0].mxu0 }
 0x15f   :  { %v180_v12 = vadd.f32 %v342_v10, %v179_v11  ;;  %v368_v13 = vpop.f32.mrb[1].mxu0 }
 0x160   :  { %v182_v14 = vpop.f32.mrb[2].mxu0 }
 0x161   :  { %v183_v15 = vadd.f32 %v342_v10, %v182_v14  ;;  %v369_v16 = vpop.f32.mrb[3].mxu0  ;;  %v186_v17 = vmax.f32 %v180_v12, 0.0 }
 0x163   :  { %v187_v18 = vmax.f32 %v183_v15, 0.0 }
 0x165   :  { %v188_v19 = vpack.c.bf16 %v187_v18, %v186_v17 }
 0x167   :  { %379 = vmatmul.mubr.msk.bf16.vlgmr.msra.gmra.mrb[0].mxu1 %vm228_vm2, %v188_v19 }
 0x23a   :  { %v266_v21 = vpop.f32.mrb[0].mxu1 }
 0x23b   :  { %v267_v22 = vadd.f32 %v346_v20, %v266_v21  ;;  %v380_v23 = vpop.f32.mrb[1].mxu1 }
 0x23c   :  { %v269_v24 = vpop.f32.mrb[2].mxu1 }
 0x23d   :  { %v270_v25 = vadd.f32 %v346_v20, %v269_v24  ;;  %v381_v26 = vpop.f32.mrb[3].mxu1  ;;  %v273_v27 = vadd.f32 %v267_v22, %v115_v3 }
 0x23f   :  { %v275_v28 = vsel %vm141_vm1, %v273_v27, 0.0  ;;  %v274_v29 = vadd.f32 %v270_v25, %v116_v4 }
 0x240   :  { %276 = vadd.xlane.f32.xlu0 %v275_v28 }
 0x241   :  { %v278_v30 = vsel %vm141_vm1, %v274_v29, 0.0 }
 0x244   :  { %279 = vadd.xlane.f32.xlu0 %v278_v30 }
 0x2cd   :  { %v277_v31 = vpop.xlane.xlu0 %276 }
 0x2ce   :  { %v282_v32 = vmul.f32 0.03125, %v277_v31 }
 0x2d0   :  { %v284_v33 = vsub.f32 %v273_v27, %v282_v32 }
 0x2d1   :  { %v280_v34 = vpop.xlane.xlu0 %279 }
 0x2d2   :  { %v283_v35 = vmul.f32 0.03125, %v280_v34  ;;  %v286_v36 = vmul.f32 %v284_v33, %v284_v33 }
 0x2d4   :  { %v285_v37 = vsub.f32 %v274_v29, %v283_v35  ;;  %v288_v38 = vsel %vm141_vm1, %v286_v36, 0.0 }
 0x2d5   :  { %289 = vadd.xlane.f32.xlu1 %v288_v38 }
 0x2d6   :  { %v287_v39 = vmul.f32 %v285_v37, %v285_v37 }
 0x2d8   :  { %v291_v40 = vsel %vm141_vm1, %v287_v39, 0.0 }
 0x2d9   :  { %292 = vadd.xlane.f32.xlu1 %v291_v40 }
 0x362   :  { %v290_v41 = vpop.xlane.xlu1 %289 }
 0x363   :  { %v294_v42 = vmul.f32 0.03125, %v290_v41 }
 0x365   :  { %v296_v43 = vadd.f32 1e-05, %v294_v42 }
 0x366   :  { %v293_v44 = vpop.xlane.xlu1 %292 }
 0x367   :  { %402 = vrsqrt.f32 %v296_v43  ;;  %v295_v45 = vmul.f32 0.03125, %v293_v44 }
 0x369   :  { %v297_v46 = vadd.f32 1e-05, %v295_v45 }
 0x36b   :  { %404 = vrsqrt.f32 %v297_v46 }
 0x371   :  { %v403_v47 = vpop.eup %402 }
 0x372   :  { %v300_v49 = vmul.f32 %v403_v47, %v284_v33 }
 0x374   :  { %v309_v51 = vmul.f32 %v352_v48, %v300_v49 }
 0x375   :  { %v405_v52 = vpop.eup %404 }
 0x376   :  { %v301_v53 = vmul.f32 %v405_v52, %v285_v37  ;;  %v318_v54 = vadd.f32 %v353_v50, %v309_v51 }
 0x378   :  { %v310_v55 = vmul.f32 %v352_v48, %v301_v53  ;;  %320 = vst.msk [vmem:[#allocation14] sm:$0xff] %vm141_vm1, %v318_v54 }
 0x37a   :  { %v319_v56 = vadd.f32 %v353_v50, %v310_v55 }
 0x37c   :  { %321 = vst.msk [vmem:[#allocation14 + $0x8] sm:$0xff] %vm141_vm1, %v319_v56 }
 0x37d   :  { %571 = shalt.err (!%p568_p4)
}
 0x37e   :  { %s572_s19 = scalar_lea.hbm %s762_s7, 256 }
 0x37f   :  { %p573_p5 = scmp.ne.s32.totalorder %s762_s7, %s572_s19  ;;  %p576_p6 = scmp.lt.u32.totalorder %s572_s19, %s762_s7 }
 0x381   :  { %p578_p7 = pnand %p576_p6, %p573_p5 }
 0x383   :  { %581 = shalt.err (!%p578_p7)
}
 0x384   :  { %333 = dma.vmem_to_hbm [thread:$0]  %s328_s11, 256, %s762_s7, [#allocation4], %s598_s5, %s598_s5, %s599_s18  }
 0x385   :  { %590 = dma.done.wait [#allocation4], 256  }
 0x386   :  { %591 = vsyncadd [#allocation4], 4294967040 }
 0x387   :  { %337 = vsyncpa [#allocation3], 1 }
 0x388   :  { %338 = vsyncpa [#allocation6], 1 }
 0x389   :  { %339 = vsyncpa [#allocation9], 1 }
 0x38a   :  { %340 = vsyncpa [#allocation12], 1 }
 0x38b   :  { %341 = vsyncpa [#allocation4], 1 }

// kernel: transformer_crf_forward.19
= control target key start
LH: loop header
LB: loop body
LE: loop exit
PB: predicated region body
PF: predicated region fallthrough
CT: control target
= control target key end

     0   :  { %13 = vsyncpa [#allocation3], 0  ;;  %s737_s0 = inlined_call_operand.hbm [shape: f32[16,32], index: 0, kind: input, shape index: {}]   ;;  %s738_s1 = inlined_call_operand.hbm [shape: bf16[32,128], index: 1, kind: input, shape index: {}]   ;;  %s739_s2 = inlined_call_operand.hbm [shape: f32[1,128], index: 2, kind: input, shape index: {}]   ;;  %s740_s3 = inlined_call_operand.hbm [shape: f32[16,1], index: 3, kind: input, shape index: {}]   ;;  %s741_s4 = inlined_call_operand.hbm [shape: s32[16,1], index: 4, kind: input, shape index: {}]   ;;  %s742_s5 = inlined_call_operand.hbm [shape: f32[16,128], index: 5, kind: output, shape index: {0}]   ;;  %s743_s6 = inlined_call_operand.hbm [shape: f32[1,1], index: 6, kind: output, shape index: {1}]   ;;  %s744_s7 = inlined_call_operand.hbm [shape: f32[1,1], index: 7, kind: output, shape index: {2}]  }
   0x1   :  { %14 = vsyncpa [#allocation6], 0 }
   0x2   :  { %15 = vsyncpa [#allocation9], 0 }
   0x3   :  { %16 = vsyncpa [#allocation4], 0 }
   0x4   :  { %17 = vsyncpa [#allocation13], 0  ;;  %s563_s24 = smov [#allocation5]   ;;  %s377_s28 = scalar_lea.hbm %s738_s1, 256 }
   0x5   :  { %s35_s25 = sshll.u32 %s563_s24, 4  ;;  %p378_p0 = scmp.ne.s32.totalorder %s738_s1, %s377_s28  ;;  %s36_s25 = int_to_ptr.vmem [resolvable:$true] %s35_s25 }
   0x6   :  { %p381_p1 = scmp.lt.u32.totalorder %s377_s28, %s738_s1 }
   0x8   :  { %p383_p2 = pnand %p381_p1, %p378_p0 }
   0xa   :  { %386 = shalt.err (!%p383_p2)
}
   0xb   :  { %s387_s10 = scalar_lea.vmem %s36_s25, 256  ;;  %p392_p4 = scmp.lt.s32.totalorder %s36_s25, %s36_s25 }
   0xc   :  { %p388_p3 = scmp.ne.s32.totalorder %s36_s25, %s387_s10  ;;  %p393_p5 = scmp.lt.s32.totalorder %s387_s10, %s387_s10 }
   0xe   :  { %p394_p6 = por %p393_p5, %p392_p4 }
  0x10   :  { %p395_p7 = pnand %p394_p6, %p388_p3 }
  0x12   :  { %398 = shalt.err (!%p395_p7)
}
  0x13   :  { %s564_s11 = smov 64   ;;  %s565_s12 = smov 4  }
  0x14   :  { %41 = dma.hbm_to_vmem [thread:$0]  %s738_s1, 256, %s36_s25, [#allocation6], %s564_s11, %s564_s11, %s565_s12  }
  0x15   :  { %s566_s15 = smov [#allocation8]   ;;  %s567_s17 = smov [#allocation2]  }
  0x16   :  { %s57_s16 = sshll.u32 %s566_s15, 4  ;;  %s23_s18 = sshll.u32 %s567_s17, 4  ;;  %s58_s16 = int_to_ptr.vmem [resolvable:$true] %s57_s16  ;;  %s24_s18 = int_to_ptr.vmem [resolvable:$true] %s23_s18 }
  0x17   :  { %s399_s21 = scalar_lea.hbm %s740_s3, 256 }
  0x18   :  { %p400_p8 = scmp.ne.s32.totalorder %s740_s3, %s399_s21  ;;  %p403_p9 = scmp.lt.u32.totalorder %s399_s21, %s740_s3 }
  0x1a   :  { %p405_p10 = pnand %p403_p9, %p400_p8 }
  0x1c   :  { %408 = shalt.err (!%p405_p10)
}
  0x1d   :  { %s409_s1 = scalar_lea.vmem %s58_s16, 256  ;;  %p414_p12 = scmp.lt.s32.totalorder %s58_s16, %s58_s16 }
  0x1e   :  { %p410_p11 = scmp.ne.s32.totalorder %s58_s16, %s409_s1  ;;  %p415_p13 = scmp.lt.s32.totalorder %s409_s1, %s409_s1 }
  0x20   :  { %p416_p0 = por %p415_p13, %p414_p12 }
  0x22   :  { %p417_p1 = pnand %p416_p0, %p410_p11 }
  0x24   :  { %420 = shalt.err (!%p417_p1)
}
  0x25   :  { %s568_s25 = smov 128   ;;  %s569_s27 = smov 8  }
  0x26   :  { %63 = dma.hbm_to_vmem [thread:$0]  %s740_s3, 256, %s58_s16, [#allocation9], %s568_s25, %s568_s25, %s569_s27  }
  0x27   :  { %s421_s9 = scalar_lea.hbm %s737_s0, 256 }
  0x28   :  { %p422_p2 = scmp.ne.s32.totalorder %s737_s0, %s421_s9  ;;  %p425_p3 = scmp.lt.u32.totalorder %s421_s9, %s737_s0 }
  0x2a   :  { %p427_p4 = pnand %p425_p3, %p422_p2 }
  0x2c   :  { %430 = shalt.err (!%p427_p4)
}
  0x2d   :  { %s431_s14 = scalar_lea.vmem %s24_s18, 256  ;;  %p436_p6 = scmp.lt.s32.totalorder %s24_s18, %s24_s18 }
  0x2e   :  { %p432_p5 = scmp.ne.s32.totalorder %s24_s18, %s431_s14  ;;  %p437_p7 = scmp.lt.s32.totalorder %s431_s14, %s431_s14 }
  0x30   :  { %p438_p8 = por %p437_p7, %p436_p6 }
  0x32   :  { %p439_p9 = pnand %p438_p8, %p432_p5 }
  0x34   :  { %442 = shalt.err (!%p439_p9)
}
  0x35   :  { %29 = dma.hbm_to_vmem [thread:$0]  %s737_s0, 256, %s24_s18, [#allocation3], %s568_s25, %s568_s25, %s569_s27  }
  0x36   :  { %s570_s16 = smov [#allocation7]   ;;  %s571_s19 = smov [#allocation10]  }
  0x37   :  { %s48_s17 = sshll.u32 %s570_s16, 4  ;;  %s69_s20 = sshll.u32 %s571_s19, 4  ;;  %s49_s17 = int_to_ptr.vmem [resolvable:$true] %s48_s17  ;;  %s70_s20 = int_to_ptr.vmem [resolvable:$true] %s69_s20 }
  0x38   :  { %s443_s23 = scalar_lea.hbm %s739_s2, 16 }
  0x39   :  { %p444_p10 = scmp.ne.s32.totalorder %s739_s2, %s443_s23  ;;  %p447_p11 = scmp.lt.u32.totalorder %s443_s23, %s739_s2 }
  0x3b   :  { %p449_p12 = pnand %p447_p11, %p444_p10 }
  0x3d   :  { %452 = shalt.err (!%p449_p12)
}
  0x3e   :  { %s453_s0 = scalar_lea.vmem %s49_s17, 16  ;;  %s457_s18 = scalar_lea.vmem %s49_s17, 32 }
  0x3f   :  { %p454_p13 = scmp.ne.s32.totalorder %s49_s17, %s453_s0  ;;  %p458_p0 = scmp.lt.s32.totalorder %s49_s17, %s49_s17 }
  0x40   :  { %p459_p1 = scmp.lt.s32.totalorder %s457_s18, %s453_s0 }
  0x42   :  { %p460_p2 = por %p459_p1, %p458_p0 }
  0x44   :  { %p461_p3 = pnand %p460_p2, %p454_p13 }
  0x46   :  { %464 = shalt.err (!%p461_p3)
}
  0x47   :  { %51 = dma.hbm_to_vmem [thread:$0]  %s739_s2, 16, %s49_s17, [#allocation6]  }
  0x48   :  { %s465_s10 = scalar_lea.hbm %s741_s4, 256 }
  0x49   :  { %p466_p4 = scmp.ne.s32.totalorder %s741_s4, %s465_s10  ;;  %p469_p5 = scmp.lt.u32.totalorder %s465_s10, %s741_s4 }
  0x4b   :  { %p471_p6 = pnand %p469_p5, %p466_p4 }
  0x4d   :  { %474 = shalt.err (!%p471_p6)
}
  0x4e   :  { %s475_s3 = scalar_lea.vmem %s70_s20, 256  ;;  %p480_p8 = scmp.lt.s32.totalorder %s70_s20, %s70_s20 }
  0x4f   :  { %p476_p7 = scmp.ne.s32.totalorder %s70_s20, %s475_s3  ;;  %p481_p9 = scmp.lt.s32.totalorder %s475_s3, %s475_s3 }
  0x51   :  { %p482_p10 = por %p481_p9, %p480_p8 }
  0x53   :  { %p483_p11 = pnand %p482_p10, %p476_p7 }
  0x55   :  { %486 = shalt.err (!%p483_p11)
}
  0x56   :  { %75 = dma.hbm_to_vmem [thread:$0]  %s741_s4, 256, %s70_s20, [#allocation9], %s568_s25, %s568_s25, %s569_s27  }
  0x57   :  { %553 = dma.done.wait [#allocation3], 256  }
  0x58   :  { %554 = vsyncadd [#allocation3], 4294967040 }
  0x59   :  { %555 = dma.done.wait [#allocation6], 272  }
  0x5a   :  { %556 = vsyncadd [#allocation6], 4294967024 }
  0x5b   :  { %557 = dma.done.wait [#allocation9], 512  }
  0x5c   :  { %558 = vsyncadd [#allocation9], 4294966784  ;;  %v572_v0 = vmov 0.0   ;;  %vm573_vm0 = vmmov 0   ;;  %v574_v1 = vmov 0   ;;  %v363_v2 = vld [vmem:[#allocation5] sm:$0xff]   ;;  %v181_v14 = vlaneseq }
  0x5d   :  { %334 = vmatprep.subr.bf16.mxu0 %v572_v0  ;;  %338 = vmatprep.mubr.msk.bf16.mxu0 %vm573_vm0, %v572_v0  ;;  %v364_v3 = vld [vmem:[#allocation5 + $0x8] sm:$0xff]   ;;  %v92_v4 = vld [vmem:[#allocation2] sm:$0xff]  ;;  %v93_v5 = vld [vmem:[#allocation2 + $0x8] sm:$0xff]  ;;  %vm118_vm1 = vcmask 261120   ;;  %vm245_vm7 = vcmask 7168   ;;  %s575_s4 = smov [#allocation11]  }
  0x5e   :  { %361 = vset.pattern.permute.xlu0 %v574_v1  ;;  %362 = vset.pattern.permute.xlu1 %v574_v1  ;;  %v163_v6 = vld [vmem:[#allocation8] sm:$0xff]  ;;  %v164_v8 = vld [vmem:[#allocation8 + $0x8] sm:$0xff]  ;;  %v94_v10 = vpack.c.bf16 %v93_v5, %v92_v4  ;;  %v690_v13 = vld [vmem:[#allocation10] sm:$0xff]  ;;  %v182_v17 = vand.u32 127, %v181_v14  ;;  %s284_s16 = sshll.u32 %s575_s4, 4  ;;  %s285_s16 = int_to_ptr.vmem [resolvable:$true] %s284_s16 }
  0x5f   :  { %335 = vmatpush3.bf16.msra.mxu0 %v363_v2  ;;  %v165_v7 = vsub.f32 1.0, %v163_v6  ;;  %v166_v9 = vsub.f32 1.0, %v164_v8  ;;  %v325_v16 = vld [vmem:[#allocation7] ss:$0 sm:$0xff]  ;;  %vm235_vm5 = vcmp.ne.s32.totalorder %v690_v13, 0  ;;  %s487_s17 = scalar_lea.vmem %s285_s16, 256  ;;  %p492_p13 = scmp.lt.s32.totalorder %s285_s16, %s285_s16 }
  0x60   :  { %336 = vmatprep.subr.bf16.mxu0 %v572_v0  ;;  %vm183_vm2 = vcmp.lt.s32.totalorder %v182_v17, 10  ;;  %v213_v29 = vld [vmem:[#allocation10 + $0x8] sm:$0xff]  ;;  %v329_v59 = vsel %vm235_vm5, 1.0, %v572_v0  ;;  %p488_p12 = scmp.ne.s32.totalorder %s285_s16, %s487_s17  ;;  %p493_p0 = scmp.lt.s32.totalorder %s487_s17, %s487_s17 }
  0x61   :  { %v167_v11 = vmul.f32 -1e+32, %v165_v7  ;;  %v168_v12 = vmul.f32 -1e+32, %v166_v9  ;;  %vm236_vm6 = vcmp.ne.s32.totalorder %v213_v29, 0  ;;  %v265_v1 = vsel %vm245_vm7, %v329_v59, 0.0 }
  0x62   :  { %v330_v60 = vsel %vm236_vm6, 1.0, %v572_v0  ;;  %p494_p1 = por %p493_p0, %p492_p13 }
  0x63   :  { %337 = vmatpush3.bf16.msra.mxu0 %v364_v3  ;;  %171 = vperm.xlu0 %361, %v167_v11   ;;  %v266_v2 = vsel %vm245_vm7, %v330_v60, 0.0 }
  0x64   :  { %v267_v4 = vadd.f32 %v266_v2, %v265_v1  ;;  %p495_p2 = pnand %p494_p1, %p488_p12 }
  0x66   :  { %339 = vmatmul.mubr.msk.bf16.vlgmr.msra.gmra.mrb[0].mxu0 %vm118_vm1, %v94_v10 }
  0x67   :  { %176 = vperm.xlu0 %361, %v168_v12  }
  0x6b   :  { %215 = vperm.xlu0 %361, %v690_v13  }
  0xe2   :  { %v172_v15 = vpop.permute.xlu0 %171 }
  0xe6   :  { %v177_v25 = vpop.permute.xlu0 %176 }
  0xea   :  { %v216_v37 = vpop.permute.xlu0 %215 }
  0xeb   :  { %vm220_vm3 = vcmp.eq.s32.totalorder %v182_v17, %v216_v37 }
 0x139   :  { %v156_v18 = vpop.f32.mrb[0].mxu0 }
 0x13a   :  { %v157_v19 = vadd.f32 %v325_v16, %v156_v18  ;;  %v340_v20 = vpop.f32.mrb[1].mxu0 }
 0x13b   :  { %v159_v21 = vpop.f32.mrb[2].mxu0 }
 0x13c   :  { %v179_v22 = vadd.f32 %v172_v15, %v157_v19  ;;  %v160_v23 = vadd.f32 %v325_v16, %v159_v21  ;;  %v341_v24 = vpop.f32.mrb[3].mxu0 }
 0x13e   :  { %v180_v26 = vadd.f32 %v177_v25, %v160_v23  ;;  %v184_v27 = vsel %vm183_vm2, %v179_v22, -3e+38 }
 0x13f   :  { %186 = vmax.xlane.f32.xlu1 %v184_v27  ;;  %v222_v40 = vsel %vm220_vm3, %v184_v27, 0.0 }
 0x140   :  { %v185_v28 = vsel %vm183_vm2, %v180_v26, -3e+38 }
 0x143   :  { %188 = vmax.xlane.f32.xlu1 %v185_v28 }
 0x154   :  { %218 = vperm.xlu1 %362, %v213_v29  }
 0x1cc   :  { %v187_v30 = vpop.xlane.xlu1 %186 }
 0x1cd   :  { %v190_v31 = vsub.f32 %v184_v27, %v187_v30 }
 0x1cf   :  { %v192_v32 = vmul.f32 1.442695, %v190_v31 }
 0x1d0   :  { %v189_v33 = vpop.xlane.xlu1 %188 }
 0x1d1   :  { %365 = vpow2.f32 %v192_v32  ;;  %v191_v34 = vsub.f32 %v185_v28, %v189_v33 }
 0x1d3   :  { %v194_v35 = vmul.f32 1.442695, %v191_v34 }
 0x1d4   :  { %v219_v38 = vpop.permute.xlu1 %218 }
 0x1d5   :  { %367 = vpow2.f32 %v194_v35  ;;  %vm221_vm4 = vcmp.eq.s32.totalorder %v182_v17, %v219_v38 }
 0x1d6   :  { %v223_v41 = vsel %vm221_vm4, %v185_v28, 0.0 }
 0x1db   :  { %v366_v36 = vpop.eup %365 }
 0x1dc   :  { %196 = vadd.xlane.f32.xlu0 %v366_v36 }
 0x1df   :  { %v368_v39 = vpop.eup %367 }
 0x1e0   :  { %224 = vadd.xlane.f32.xlu0 %v222_v40  ;;  %198 = vadd.xlane.f32.xlu1 %v368_v39 }
 0x1e4   :  { %226 = vadd.xlane.f32.xlu0 %v223_v41 }
 0x269   :  { %v197_v42 = vpop.xlane.xlu0 %196 }
 0x26a   :  { %369 = vrcp.f32 %v197_v42 }
 0x26b   :  { %371 = vlog2.f32 %v197_v42 }
 0x26d   :  { %v199_v43 = vpop.xlane.xlu1 %198  ;;  %v225_v48 = vpop.xlane.xlu0 %224 }
 0x26e   :  { %373 = vrcp.f32 %v199_v43 }
 0x26f   :  { %375 = vlog2.f32 %v199_v43 }
 0x271   :  { %v227_v56 = vpop.xlane.xlu0 %226 }
 0x274   :  { %v370_v44 = vpop.eup %369 }
 0x275   :  { %v372_v45 = vpop.eup %371  ;;  %v201_v46 = vmul.f32 %v370_v44, %v366_v36 }
 0x276   :  { %v207_v47 = vmul.f32 0.6931472, %v372_v45 }
 0x277   :  { %204 = vst [vmem:[#allocation11] sm:$0xff] %v201_v46 }
 0x278   :  { %v374_v49 = vpop.eup %373  ;;  %v210_v50 = vadd.f32 %v207_v47, %v187_v30 }
 0x279   :  { %v376_v51 = vpop.eup %375  ;;  %v203_v52 = vmul.f32 %v374_v49, %v368_v39 }
 0x27a   :  { %v241_v53 = vsub.f32 %v210_v50, %v225_v48  ;;  %v209_v54 = vmul.f32 0.6931472, %v376_v51 }
 0x27b   :  { %205 = vst [vmem:[#allocation11 + $0x8] sm:$0xff] %v203_v52 }
 0x27c   :  { %v211_v55 = vadd.f32 %v209_v54, %v189_v33  ;;  %v243_v57 = vsel %vm235_vm5, %v241_v53, 0.0 }
 0x27d   :  { %v246_v62 = vsel %vm245_vm7, %v243_v57, 0.0 }
 0x27e   :  { %v242_v58 = vsub.f32 %v211_v55, %v227_v56 }
 0x280   :  { %v244_v61 = vsel %vm236_vm6, %v242_v58, 0.0 }
 0x281   :  { %v247_v63 = vsel %vm245_vm7, %v244_v61, 0.0 }
 0x282   :  { %v248_v3 = vadd.f32 %v247_v63, %v246_v62 }
 0x284   :  { %249 = vadd.xlane.f32.xlu0 %v248_v3 }
 0x288   :  { %268 = vadd.xlane.f32.xlu0 %v267_v4 }
 0x289   :  { %498 = shalt.err (!%p495_p2)
}
 0x28a   :  { %s499_s21 = scalar_lea.hbm %s742_s5, 256 }
 0x28b   :  { %p500_p3 = scmp.ne.s32.totalorder %s742_s5, %s499_s21  ;;  %p503_p4 = scmp.lt.u32.totalorder %s499_s21, %s742_s5 }
 0x28d   :  { %p505_p5 = pnand %p503_p4, %p500_p3 }
 0x28f   :  { %508 = shalt.err (!%p505_p5)
}
 0x290   :  { %290 = dma.vmem_to_hbm [thread:$0]  %s285_s16, 256, %s742_s5, [#allocation4], %s568_s25, %s568_s25, %s569_s27   ;;  %vm259_vm8 = vcmask 0  }
 0x291   :  { %s576_s0 = smov [#allocation12]   ;;  %s577_s25 = smov [#allocation14]  }
 0x292   :  { %s297_s18 = sshll.u32 %s576_s0, 4  ;;  %s307_s27 = sshll.u32 %s577_s25, 4  ;;  %s298_s18 = int_to_ptr.vmem [resolvable:$true] %s297_s18  ;;  %s308_s27 = int_to_ptr.vmem [resolvable:$true] %s307_s27 }
 0x293   :  { %s509_s29 = scalar_lea.vmem %s298_s18, 16  ;;  %s513_s30 = scalar_lea.vmem %s298_s18, 32 }
 0x294   :  { %p510_p6 = scmp.ne.s32.totalorder %s298_s18, %s509_s29  ;;  %p514_p7 = scmp.lt.s32.totalorder %s298_s18, %s298_s18 }
 0x295   :  { %p515_p8 = scmp.lt.s32.totalorder %s513_s30, %s509_s29 }
 0x297   :  { %p516_p9 = por %p515_p8, %p514_p7 }
 0x299   :  { %p517_p10 = pnand %p516_p9, %p510_p6 }
 0x311   :  { %v250_v0 = vpop.xlane.xlu0 %249 }
 0x312   :  { %v251_v5 = vrot.slane %v250_v0, 4 }
 0x314   :  { %v252_v6 = vadd.f32 %v251_v5, %v250_v0 }
 0x315   :  { %v269_v7 = vpop.xlane.xlu0 %268 }
 0x316   :  { %v253_v8 = vrot.slane %v252_v6, 2  ;;  %v270_v9 = vrot.slane %v269_v7, 4 }
 0x318   :  { %v271_v10 = vadd.f32 %v270_v9, %v269_v7  ;;  %v254_v11 = vadd.f32 %v253_v8, %v252_v6 }
 0x31a   :  { %v272_v12 = vrot.slane %v271_v10, 2  ;;  %v255_v13 = vrot.slane %v254_v11, 1 }
 0x31c   :  { %v273_v14 = vadd.f32 %v272_v12, %v271_v10  ;;  %v256_v15 = vadd.f32 %v255_v13, %v254_v11 }
 0x31e   :  { %342 = vpush %v256_v15  ;;  %v274_v16 = vrot.slane %v273_v14, 1 }
 0x320   :  { %v275_v17 = vadd.f32 %v274_v16, %v273_v14 }
 0x322   :  { %344 = vpush %v275_v17 }
 0x34f   :  { %s343_s5 = spop %342 }
 0x350   :  { %v258_v18 = vstv %s343_s5 }
 0x351   :  { %260 = vst.msk [vmem:[#allocation12] sm:$0x1] %vm259_vm8, %v258_v18 }
 0x352   :  { %520 = shalt.err (!%p517_p10)
}
 0x353   :  { %s521_s10 = scalar_lea.hbm %s743_s6, 16 }
 0x354   :  { %p522_p11 = scmp.ne.s32.totalorder %s743_s6, %s521_s10  ;;  %p525_p12 = scmp.lt.u32.totalorder %s521_s10, %s743_s6 }
 0x356   :  { %p527_p13 = pnand %p525_p12, %p522_p11 }
 0x358   :  { %530 = shalt.err (!%p527_p13)
}
 0x359   :  { %300 = dma.vmem_to_hbm [thread:$0]  %s298_s18, 16, %s743_s6, [#allocation13]  }
 0x35a   :  { %s345_s15 = spop %344  ;;  %s531_s4 = scalar_lea.vmem %s308_s27, 16 }
 0x35b   :  { %v277_v19 = vstv %s345_s15  ;;  %p532_p0 = scmp.ne.s32.totalorder %s308_s27, %s531_s4  ;;  %s535_s16 = scalar_lea.vmem %s308_s27, 32 }
 0x35c   :  { %278 = vst.msk [vmem:[#allocation14] sm:$0x1] %vm259_vm8, %v277_v19  ;;  %p536_p1 = scmp.lt.s32.totalorder %s308_s27, %s308_s27  ;;  %p537_p2 = scmp.lt.s32.totalorder %s535_s16, %s531_s4 }
 0x35e   :  { %p538_p3 = por %p537_p2, %p536_p1 }
 0x360   :  { %p539_p4 = pnand %p538_p3, %p532_p0 }
 0x362   :  { %542 = shalt.err (!%p539_p4)
}
 0x363   :  { %s543_s20 = scalar_lea.hbm %s744_s7, 16 }
 0x364   :  { %p544_p5 = scmp.ne.s32.totalorder %s744_s7, %s543_s20  ;;  %p547_p6 = scmp.lt.u32.totalorder %s543_s20, %s744_s7 }
 0x366   :  { %p549_p7 = pnand %p547_p6, %p544_p5 }
 0x368   :  { %552 = shalt.err (!%p549_p7)
}
 0x369   :  { %310 = dma.vmem_to_hbm [thread:$0]  %s308_s27, 16, %s744_s7, [#allocation13]  }
 0x36a   :  { %559 = dma.done.wait [#allocation4], 256  }
 0x36b   :  { %560 = vsyncadd [#allocation4], 4294967040 }
 0x36c   :  { %561 = dma.done.wait [#allocation13], 32  }
 0x36d   :  { %562 = vsyncadd [#allocation13], 4294967264 }
 0x36e   :  { %320 = vsyncpa [#allocation3], 1 }
 0x36f   :  { %321 = vsyncpa [#allocation6], 1 }
 0x370   :  { %322 = vsyncpa [#allocation9], 1 }
 0x371   :  { %323 = vsyncpa [#allocation4], 1 }
 0x372   :  { %324 = vsyncpa [#allocation13], 1 }

// kernel: transformer_crf_forward.11
= control target key start
LH: loop header
LB: loop body
LE: loop exit
PB: predicated region body
PF: predicated region fallthrough
CT: control target
= control target key end

     0   :  { %s2238_s0 = inlined_call_operand.hbm [shape: s32[2], index: 0, kind: input, shape index: {}]   ;;  %s2239_s1 = inlined_call_operand.hbm [shape: f32[2,8,32], index: 1, kind: input, shape index: {}]   ;;  %s2240_s2 = inlined_call_operand.hbm [shape: bf16[32,96], index: 2, kind: input, shape index: {}]   ;;  %s2241_s3 = inlined_call_operand.hbm [shape: f32[1,96], index: 3, kind: input, shape index: {}]   ;;  %s2242_s4 = inlined_call_operand.hbm [shape: bf16[32,32], index: 4, kind: input, shape index: {}]   ;;  %s2243_s5 = inlined_call_operand.hbm [shape: f32[1,32], index: 5, kind: input, shape index: {}]   ;;  %s2244_s6 = inlined_call_operand.hbm [shape: f32[1,32], index: 6, kind: input, shape index: {}]   ;;  %s2245_s7 = inlined_call_operand.hbm [shape: f32[1,32], index: 7, kind: input, shape index: {}]   ;;  %s2246_s8 = inlined_call_operand.hbm [shape: f32[2,8,32], index: 8, kind: output, shape index: {}]  }
   0x1   :  { %s1457_s29 = scalar_lea.hbm %s2238_s0, 16 }
   0x2   :  { %p1458_p0 = scmp.ne.s32.totalorder %s2238_s0, %s1457_s29  ;;  %p1461_p1 = scmp.lt.u32.totalorder %s1457_s29, %s2238_s0 }
   0x4   :  { %p1463_p2 = pnand %p1461_p1, %p1458_p0 }
   0x6   :  { %1466 = shalt.err (!%p1463_p2)  }
   0x7   :  { %s1747_s12 = smov [#allocation4]  }
   0x8   :  { %14 = dma.hbm_to_smem %s2238_s0, 16, %s1747_s12, [#allocation3] }
   0x9   :  { %1709 = dma.done.wait [#allocation3], 16 }
   0xa   :  { %1710 = vsyncadd [#allocation3], 4294967280 }
   0xb   :  { %16 = sfence }
   0xc   :  { %17 = vsyncpa [#allocation6], 0 }
   0xd   :  { %19 = vsyncpa [#allocation6 + $0x1], 0 }
   0xe   :  { %20 = vsyncpa [#allocation9], 0 }
   0xf   :  { %21 = vsyncpa [#allocation12], 0 }
  0x10   :  { %22 = vsyncpa [#allocation15], 0 }
  0x11   :  { %23 = vsyncpa [#allocation7], 0 }
  0x12   :  { %25 = vsyncpa [#allocation7 + $0x1], 0  ;;  %s1832_s15 = smov 0   ;;  %s1834_s16 = smov 0  }
  0x13   :  { %s1836_s17 = smov 0   ;;  %s1838_s18 = smov 0  }
  0x14 LB: > { %s1748_s0 = smov [#allocation8]   ;;  %s1853_s20 = sadd.s32 4294967295, %s1745_s18   ;;  %s1745_s18 = sphi %s1838_s18, %s2272_s18   ;;  %s1741_s17 = sphi %s1836_s17, %s2271_s17   ;;  %s1737_s16 = sphi %s1834_s16, %s2270_s16   ;;  %s1733_s15 = sphi %s1832_s15, %s2269_s15  }
  0x15   : > { %s226_s19 = sshll.u32 %s1748_s0, 4  ;;  %p1175_p3 = scmp.ge.s32.totalorder %s1745_s18, 1  ;;  %s1858_s19 = int_to_ptr.vmem [resolvable:$true] %s226_s19 }
  0x16   : > { %p2247_p4 = scmp.eq.s32.totalorder %s1853_s20, 0  ;;  %p214_p5 = scmp.lt.s32.totalorder %s1745_s18, 3 }
  0x17   : > { %s1749_s22 = smov [#allocation11]   ;;  %s1750_s25 = smov [#allocation14]  }
  0x18   : > { %p1860_p6 = pnand %p1175_p3, %p214_p5  ;;  %s250_s23 = sshll.u32 %s1749_s22, 4  ;;  %s1873_s23 = int_to_ptr.vmem [resolvable:$true] %s250_s23 }
  0x19   : > { %s275_s26 = sshll.u32 %s1750_s25, 4  ;;  %s1467_s29 = scalar_lea.hbm %s2240_s2, 256  ;;  %s1875_s26 = int_to_ptr.vmem [resolvable:$true] %s275_s26 }
  0x1a   : > { %s2250_s21 = scalar_select %p1860_p6, 1, 0 }
  0x1b   : > { %p1336_p8 = pneg %p1860_p6  ;;  %p1468_p10 = scmp.ne.s32.totalorder %s2240_s2, %s1467_s29 }
  0x1c   : > { %p1474_p0 = scmp.lt.u32.totalorder %s1467_s29, %s2240_s2 }
  0x1d   : > { %p1869_p9 = pnand %p1336_p8, %p2247_p4 }
  0x1f   : > { %p1885_p11 = pneg %p1869_p9 }
  0x21   : > { %p1470_p12 = pnand %p1885_p11, %p1468_p10 }
  0x23   : > { %p1471_p13 = pneg %p1470_p12 }
  0x25   : > { %p1476_p1 = pnand %p1474_p0, %p1471_p13 }
  0x27   : > { %1479 = shalt.err (!%p1476_p1)
}
  0x28   : > { %s1480_s13 = scalar_lea.vmem %s1858_s19, 256  ;;  %p1488_p8 = scmp.lt.s32.totalorder %s1858_s19, %s1858_s19 }
  0x29   : > { %p1481_p2 = scmp.ne.s32.totalorder %s1858_s19, %s1480_s13  ;;  %p1489_p7 = scmp.lt.s32.totalorder %s1480_s13, %s1480_s13 }
  0x2b   : > { %p1483_p3 = pnand %p1481_p2, %p1885_p11  ;;  %p1490_p10 = por %p1489_p7, %p1488_p8 }
  0x2d   : > { %p1484_p5 = pneg %p1483_p3 }
  0x2f   : > { %p1491_p12 = pnand %p1490_p10, %p1484_p5 }
  0x31   : > { %1494 = shalt.err (!%p1491_p12)
}
  0x32   : > { %s1751_s14 = smov 64   ;;  %s1752_s0 = smov 4  }
  0x33   : > { %1339 = dma.hbm_to_vmem [thread:$0]  (!%p1869_p9), %s2240_s2, 256, %s1858_s19, [#allocation9], %s1751_s14, %s1751_s14, %s1752_s0  }
  0x34   : > { %s1495_s29 = scalar_lea.hbm %s2242_s4, 256 }
  0x35   : > { %p1496_p7 = scmp.ne.s32.totalorder %s2242_s4, %s1495_s29  ;;  %p1502_p1 = scmp.lt.u32.totalorder %s1495_s29, %s2242_s4 }
  0x37   : > { %p1498_p13 = pnand %p1496_p7, %p1885_p11 }
  0x39   : > { %p1499_p0 = pneg %p1498_p13 }
  0x3b   : > { %p1504_p2 = pnand %p1502_p1, %p1499_p0 }
  0x3d   : > { %1507 = shalt.err (!%p1504_p2)
}
  0x3e   : > { %s1508_s19 = scalar_lea.vmem %s1873_s23, 256  ;;  %p1516_p10 = scmp.lt.s32.totalorder %s1873_s23, %s1873_s23 }
  0x3f   : > { %p1509_p3 = scmp.ne.s32.totalorder %s1873_s23, %s1508_s19  ;;  %p1517_p12 = scmp.lt.s32.totalorder %s1508_s19, %s1508_s19 }
  0x41   : > { %p1511_p5 = pnand %p1509_p3, %p1885_p11  ;;  %p1518_p7 = por %p1517_p12, %p1516_p10 }
  0x43   : > { %p1512_p8 = pneg %p1511_p5 }
  0x45   : > { %p1519_p13 = pnand %p1518_p7, %p1512_p8 }
  0x47   : > { %1522 = shalt.err (!%p1519_p13)
}
  0x48   : > { %1345 = dma.hbm_to_vmem [thread:$0]  (!%p1869_p9), %s2242_s4, 256, %s1873_s23, [#allocation12], %s1751_s14, %s1751_s14, %s1752_s0  }
  0x49   : > { %s1523_s28 = scalar_lea.hbm %s2244_s6, 16 }
  0x4a   : > { %p1524_p0 = scmp.ne.s32.totalorder %s2244_s6, %s1523_s28  ;;  %p1530_p3 = scmp.lt.u32.totalorder %s1523_s28, %s2244_s6 }
  0x4c   : > { %p1526_p1 = pnand %p1524_p0, %p1885_p11 }
  0x4e   : > { %p1527_p2 = pneg %p1526_p1 }
  0x50   : > { %p1532_p5 = pnand %p1530_p3, %p1527_p2 }
  0x52   : > { %1535 = shalt.err (!%p1532_p5)
}
  0x53   : > { %s1536_s23 = scalar_lea.vmem %s1875_s26, 16  ;;  %s1543_s14 = scalar_lea.vmem %s1875_s26, 32 }
  0x54   : > { %p1537_p8 = scmp.ne.s32.totalorder %s1875_s26, %s1536_s23  ;;  %p1544_p7 = scmp.lt.s32.totalorder %s1875_s26, %s1875_s26 }
  0x55   : > { %p1545_p13 = scmp.lt.s32.totalorder %s1543_s14, %s1536_s23 }
  0x56   : > { %p1539_p10 = pnand %p1537_p8, %p1885_p11 }
  0x57   : > { %p1546_p0 = por %p1545_p13, %p1544_p7 }
  0x58   : > { %p1540_p12 = pneg %p1539_p10 }
  0x5a   : > { %p1547_p1 = pnand %p1546_p0, %p1540_p12 }
  0x5c   : > { %1550 = shalt.err (!%p1547_p1)
}
  0x5d   : > { %1351 = dma.hbm_to_vmem [thread:$0]  (!%p1869_p9), %s2244_s6, 16, %s1875_s26, [#allocation15]  }
  0x5e   : > { %s1753_s19 = smov [#allocation10]   ;;  %s1754_s22 = smov [#allocation13]  }
  0x5f   : > { %s240_s13 = sshll.u32 %s1753_s19, 4  ;;  %s264_s25 = sshll.u32 %s1754_s22, 4  ;;  %s241_s13 = int_to_ptr.vmem [resolvable:$true] %s240_s13  ;;  %s265_s25 = int_to_ptr.vmem [resolvable:$true] %s264_s25 }
  0x60   : > { %s1551_s29 = scalar_lea.hbm %s2241_s3, 16 }
  0x61   : > { %p1552_p2 = scmp.ne.s32.totalorder %s2241_s3, %s1551_s29  ;;  %p1558_p8 = scmp.lt.u32.totalorder %s1551_s29, %s2241_s3 }
  0x63   : > { %p1554_p3 = pnand %p1552_p2, %p1885_p11 }
  0x65   : > { %p1555_p5 = pneg %p1554_p3 }
  0x67   : > { %p1560_p10 = pnand %p1558_p8, %p1555_p5 }
  0x69   : > { %1563 = shalt.err (!%p1560_p10)
}
  0x6a   : > { %s1564_s26 = scalar_lea.vmem %s241_s13, 16  ;;  %s1571_s14 = scalar_lea.vmem %s241_s13, 32 }
  0x6b   : > { %p1565_p12 = scmp.ne.s32.totalorder %s241_s13, %s1564_s26  ;;  %p1572_p0 = scmp.lt.s32.totalorder %s241_s13, %s241_s13 }
  0x6c   : > { %p1573_p1 = scmp.lt.s32.totalorder %s1571_s14, %s1564_s26 }
  0x6d   : > { %p1567_p7 = pnand %p1565_p12, %p1885_p11 }
  0x6e   : > { %p1574_p4 = por %p1573_p1, %p1572_p0 }
  0x6f   : > { %p1568_p13 = pneg %p1567_p7 }
  0x71   : > { %p1575_p6 = pnand %p1574_p4, %p1568_p13 }
  0x73   : > { %1578 = shalt.err (!%p1575_p6)
}
  0x74   : > { %1342 = dma.hbm_to_vmem [thread:$0]  (!%p1869_p9), %s2241_s3, 16, %s241_s13, [#allocation9]  }
  0x75   : > { %s1579_s27 = scalar_lea.hbm %s2243_s5, 16 }
  0x76   : > { %p1580_p2 = scmp.ne.s32.totalorder %s2243_s5, %s1579_s27  ;;  %p1586_p6 = scmp.lt.u32.totalorder %s1579_s27, %s2243_s5 }
  0x78   : > { %p1582_p3 = pnand %p1580_p2, %p1885_p11 }
  0x7a   : > { %p1583_p4 = pneg %p1582_p3 }
  0x7c   : > { %p1588_p5 = pnand %p1586_p6, %p1583_p4 }
  0x7e   : > { %1591 = shalt.err (!%p1588_p5)
}
  0x7f   : > { %s1592_s11 = scalar_lea.vmem %s265_s25, 16  ;;  %s1599_s13 = scalar_lea.vmem %s265_s25, 32 }
  0x80   : > { %p1593_p8 = scmp.ne.s32.totalorder %s265_s25, %s1592_s11  ;;  %p1600_p7 = scmp.lt.s32.totalorder %s265_s25, %s265_s25 }
  0x81   : > { %p1601_p13 = scmp.lt.s32.totalorder %s1599_s13, %s1592_s11 }
  0x82   : > { %p1595_p10 = pnand %p1593_p8, %p1885_p11 }
  0x83   : > { %p1602_p0 = por %p1601_p13, %p1600_p7 }
  0x84   : > { %p1596_p12 = pneg %p1595_p10 }
  0x86   : > { %p1603_p1 = pnand %p1602_p0, %p1596_p12 }
  0x88   : > { %1606 = shalt.err (!%p1603_p1)
}
  0x89   : > { %1348 = dma.hbm_to_vmem [thread:$0]  (!%p1869_p9), %s2243_s5, 16, %s265_s25, [#allocation12]  }
  0x8a   : > { %s1755_s14 = smov [#allocation16]   ;;  %s1607_s22 = scalar_lea.hbm %s2245_s7, 16 }
  0x8b   : > { %s286_s0 = sshll.u32 %s1755_s14, 4  ;;  %p1608_p2 = scmp.ne.s32.totalorder %s2245_s7, %s1607_s22  ;;  %s287_s0 = int_to_ptr.vmem [resolvable:$true] %s286_s0 }
  0x8c   : > { %p1614_p6 = scmp.lt.u32.totalorder %s1607_s22, %s2245_s7 }
  0x8d   : > { %p1610_p3 = pnand %p1608_p2, %p1885_p11 }
  0x8f   : > { %p1611_p4 = pneg %p1610_p3 }
  0x91   : > { %p1616_p5 = pnand %p1614_p6, %p1611_p4 }
  0x93   : > { %1619 = shalt.err (!%p1616_p5)
}
  0x94   : > { %s1620_s25 = scalar_lea.vmem %s287_s0, 16  ;;  %s1627_s9 = scalar_lea.vmem %s287_s0, 32 }
  0x95   : > { %p1621_p8 = scmp.ne.s32.totalorder %s287_s0, %s1620_s25  ;;  %p1628_p7 = scmp.lt.s32.totalorder %s287_s0, %s287_s0 }
  0x96   : > { %p1629_p13 = scmp.lt.s32.totalorder %s1627_s9, %s1620_s25 }
  0x97   : > { %p1623_p10 = pnand %p1621_p8, %p1885_p11 }
  0x98   : > { %p1630_p0 = por %p1629_p13, %p1628_p7 }
  0x99   : > { %p1624_p12 = pneg %p1623_p10 }
  0x9b   : > { %p1631_p1 = pnand %p1630_p0, %p1624_p12 }
  0x9d   : > { %1634 = shalt.err (!%p1631_p1)
}
  0x9e   : > { %1354 = dma.hbm_to_vmem [thread:$0]  (!%p1869_p9), %s2245_s7, 16, %s287_s0, [#allocation15]  }
  0x9f   : > { %s1174_s10 = sadd.s32 4294967294, %s1745_s18   ;;  %s2009_s24 = sadd.s32 1, %s1745_s18  }
  0xa0   : > { %s35_s23 = ssub.s32 %s1745_s18, %s2009_s24  ;;  %s38_s26 = sadd.s32 1, %s1741_s17 }
  0xa1   : > { %p36_p11 = scmp.eq.s32.totalorder %s35_s23, 0  ;;  %p45_p2 = scmp.ne.s32.totalorder %s1741_s17, %s1737_s16 }
  0xa2   : > { %p46_p3 = scmp.eq.s32.totalorder %s1745_s18, 0  ;;  %p51_p4 = scmp.ne.s32.totalorder %s1737_s16, %s1733_s15 }
  0xa3   : > { %s2020_s14 = scalar_select %p36_p11, %s1741_s17, %s38_s26  }
  0xa4   : > { %p2022_p6 = por %p46_p3, %p45_p2  ;;  %p2254_p5 = scmp.eq.s32.totalorder %s1853_s20, 0 }
  0xa5   : > { %p201_p8 = scmp.eq.s32.totalorder %s1853_s20, 1  ;;  %p207_p10 = scmp.eq.s32.totalorder %s1174_s10, 1 }
  0xa6   : > { %p2028_p9 = por %p2254_p5, %p51_p4  ;;  %p1369_p12 = scmp.lt.s32.totalorder %s1745_s18, 2 }
  0xa7   : > { %s297_s19 = sand.u32 1, %s1741_s17   ;;  %p2035_p7 = por %p201_p8, %p45_p2 }
  0xa8   : > { %p2039_p13 = por %p207_p10, %p51_p4  ;;  %s1183_s28 = sshll.u32 %s297_s19, 3 }
  0xa9   : > { %s2256_s22 = scalar_select %p2035_p7, 1, 0 }
  0xaa   : > { %s2257_s27 = scalar_select %p2039_p13, 1, 0 }
  0xab   : > { %s1184_s29 = sshll.u32 %s1745_s18, 7  ;;  %s301_s11 = scalar_lea.vmem [#allocation5], %s1183_s28 }
  0xac   : > { %s2047_s9 = scalar_lea.hbm %s2239_s1, %s1184_s29  ;;  %s308_s13 = sshll.u32 %s301_s11, 4  ;;  %s2049_s13 = int_to_ptr.vmem [resolvable:$true] %s308_s13 }
  0xad   : > { %p2053_p0 = pnand %p1369_p12, %p2022_p6  ;;  %s298_s23 = scalar_lea.sflag [#allocation6], %s297_s19 }
  0xae   : > { %s1635_s26 = scalar_lea.hbm %s2047_s9, 128  ;;  %s1640_s30 = scalar_lea.hbm %s2239_s1, 256 }
  0xaf   : > { %p1636_p1 = scmp.ne.s32.totalorder %s2047_s9, %s1635_s26  ;;  %p1637_p11 = pneg %p2053_p0 }
  0xb0   : > { %p1641_p4 = scmp.lt.u32.totalorder %s2047_s9, %s2239_s1  ;;  %p1642_p6 = scmp.lt.u32.totalorder %s1640_s30, %s1635_s26 }
  0xb1   : > { %p1638_p2 = pnand %p1637_p11, %p1636_p1  ;;  %p1644_p8 = scmp.lt.u32.totalorder %s1635_s26, %s2047_s9 }
  0xb2   : > { %p1643_p5 = por %p1642_p6, %p1641_p4 }
  0xb3   : > { %p1639_p3 = pneg %p1638_p2 }
  0xb4   : > { %p1645_p10 = por %p1644_p8, %p1643_p5 }
  0xb6   : > { %p1646_p12 = pnand %p1645_p10, %p1639_p3 }
  0xb8   : > { %1649 = shalt.err (!%p1646_p12)
}
  0xb9   : > { %s1650_s19 = scalar_lea.vmem %s2049_s13, 128  ;;  %s1756_s11 = smov [#allocation5]  }
  0xba   : > { %p1651_p1 = scmp.ne.s32.totalorder %s2049_s13, %s1650_s19  ;;  %s1655_s28 = sshll.u32 %s1756_s11, 4  ;;  %s1656_s28 = int_to_ptr.vmem [resolvable:$false] %s1655_s28 }
  0xbb   : > { %s1657_s29 = scalar_lea.vmem %s1656_s28, 256  ;;  %p1658_p7 = scmp.lt.s32.totalorder %s2049_s13, %s1656_s28 }
  0xbc   : > { %p1653_p2 = pnand %p1651_p1, %p1637_p11  ;;  %p1659_p4 = scmp.lt.s32.totalorder %s1657_s29, %s1650_s19 }
  0xbe   : > { %p1654_p13 = pneg %p1653_p2  ;;  %p1660_p6 = por %p1659_p4, %p1658_p7 }
  0xc0   : > { %p1661_p5 = pnand %p1660_p6, %p1654_p13 }
  0xc2   : > { %1664 = shalt.err (!%p1661_p5)
}
  0xc3   : > { %1358 = dma.hbm_to_vmem [thread:$0]  (!%p2053_p0), %s2047_s9, 128, %s2049_s13, %s298_s23  }
  0xc4   : > { %p2259_p3 = scmp.ne.s32.totalorder %s2250_s21, 0 }
  0xc5   : > { %s2085_s26 = sand.u32 (!%p2259_p3), 1, %s1737_s16  }
  0xc6   : > { %317 = sbr.rel (%p2259_p3) target bundleno = 2038 (0x7f6), region = 48  ;;  %s1186_s30 = sshll.u32 (!%p2259_p3), %s2085_s26, 3 }
  0xc7   : > { %s320_s12 = scalar_lea.sflag (!%p2259_p3), [#allocation6], %s2085_s26  ;;  %s323_s25 = scalar_lea.vmem (!%p2259_p3), [#allocation5], %s1186_s30 }
  0xcd   : > { %1712 = dma.done.wait (%p2028_p9), %s320_s12, 128  }
  0xce   : > { %1714 = vsyncadd (%p2028_p9), %s320_s12, 4294967168  ;;  %p2260_p7 = scmp.eq.s32.totalorder %s1853_s20, 0 }
  0xd0   : > { %1716 = dma.done.wait (%p2260_p7), [#allocation9], 272   ;;  %p2261_p13 = pmov %p2260_p7 }
  0xd1   : > { %p2262_p0 = pmov %p2260_p7 }
  0xd2   : > { %1718 = vsyncadd (%p2261_p13), [#allocation9], 4294967024 }
  0xd3   : > { %1720 = dma.done.wait (%p2262_p0), [#allocation12], 272   ;;  %p2263_p11 = pmov %p2262_p0 }
  0xd4   : > { %p2264_p8 = pmov %p2262_p0 }
  0xd5   : > { %1722 = vsyncadd (%p2263_p11), [#allocation12], 4294967024 }
  0xd6   : > { %1724 = dma.done.wait (%p2264_p8), [#allocation15], 32   ;;  %p2265_p10 = pmov %p2262_p0 }
  0xd7   : > { %v1757_v0 = vmov 0.0   ;;  %vm1758_vm0 = vmmov 0   ;;  %v1435_v1 = vld [vmem:[#allocation8] sm:$0xff]   ;;  %v1436_v2 = vld [vmem:[#allocation8 + $0x8] sm:$0xff]   ;;  %v2113_v3 = vld [vmem:[%s323_s25] sm:$0xff]  ;;  %vm410_vm1 = vcmask 261120   ;;  %v381_v23 = vlaneseq }
  0xd8   : > { %1726 = vsyncadd (%p2265_p10), [#allocation15], 4294967264  ;;  %1244 = vmatprep.subr.bf16.mxu0 %v1757_v0  ;;  %1248 = vmatprep.mubr.msk.bf16.mxu0 %vm1758_vm0, %v1757_v0  ;;  %v386_v4 = vpack.c.bf16 %v2113_v3, %v2113_v3  ;;  %v1194_v5 = vld [vmem:[#allocation10] ss:$0 sm:$0xff]  ;;  %s1759_s21 = smov 120   ;;  %s1760_s0 = smov 96  }
  0xd9   : > { %1252 = vmatprep.subr.bf16.mxu1 %v1757_v0  ;;  %1254 = vmatprep.mubr.msk.bf16.mxu1 %vm1758_vm0, %v1757_v0  ;;  %s1761_s9 = smov 80   ;;  %s1762_s13 = smov 88   ;;  %vm458_vm2 = vcmask 64512   ;;  %v382_v24 = vand.u32 127, %v381_v23  ;;  %v1766_v27 = vmov -1e+30  }
  0xda   : > { %1245 = vmatpush3.bf16.msra.mxu0 %v1435_v1  ;;  %s1763_s10 = smov 72   ;;  %s1764_s23 = smov 112   ;;  %vm524_vm4 = vcmask 1043456   ;;  %vm569_vm5 = vcmask 60416   ;;  %vm690_vm6 = vcmask 126016   ;;  %vm811_vm7 = vcmask 191616  }
  0xdb   : > { %1246 = vmatprep.subr.bf16.mxu0 %v1757_v0  ;;  %s1765_s19 = smov 104   ;;  %s380_s11 = sld [smem:[#allocation4 + %s1853_s20]]  ;;  %vm932_vm8 = vcmask 257216  }
  0xdc   : > { %s1767_s28 = smov 56   ;;  %s1768_s29 = smov 64  }
  0xdd   : > { %s1769_s12 = smov 40   ;;  %s1770_s25 = smov 48  }
  0xde   : > { %1247 = vmatpush3.bf16.msra.mxu0 %v1436_v2  ;;  %p2266_p12 = scmp.ne.s32.totalorder %s2256_s22, 0 }
  0xdf   : > { %1258 = vmatprep.subr.bf16.mxu0 %v1757_v0 }
  0xe1   : > { %1249 = vmatmul.mubr.msk.bf16.vlgmr.msra.gmra.mrb[0].mxu0 %vm410_vm1, %v386_v4  ;;  %v383_v25 = vstv %s380_s11 }
  0xe2   : > { %1260 = vmatprep.mubr.msk.bf16.mxu0 %vm1758_vm0, %v1757_v0  ;;  %vm384_vm3 = vcmp.lt.s32.totalorder %v382_v24, %v383_v25 }
  0xe3   : > { %v385_v28 = vsel %vm384_vm3, 0.0, %v1766_v27 }
 0x1b4   : > { %v448_v6 = vpop.f32.mrb[0].mxu0 }
 0x1b5   : > { %v449_v7 = vadd.f32 %v1194_v5, %v448_v6  ;;  %v1250_v8 = vpop.f32.mrb[1].mxu0 }
 0x1b6   : > { %v451_v9 = vpop.f32.mrb[2].mxu0 }
 0x1b7   : > { %v2122_v10 = vpack.c.bf16 %v449_v7, %v449_v7  ;;  %v1251_v11 = vpop.f32.mrb[3].mxu0 }
 0x1b9   : > { %571 = vrot.lane.b32.xlu1 %v2122_v10, %s1759_s21  ;;  %456 = vrot.lane.b32.xlu0 %v2122_v10, %s1760_s0  ;;  %s1771_s21 = smov 8   ;;  %s1772_s0 = smov 16  }
 0x1bd   : > { %694 = vrot.lane.b32.xlu1 %v2122_v10, %s1761_s9  ;;  %573 = vrot.lane.b32.xlu0 %v2122_v10, %s1762_s13  ;;  %s1773_s9 = smov 24   ;;  %s1216_s13 = sshll.u32 %s1853_s20, 7 }
 0x1be   : > { %s1774_s20 = smov [#allocation17]  }
 0x1c1   : > { %815 = vrot.lane.b32.xlu1 %v2122_v10, %s1763_s10  ;;  %692 = vrot.lane.b32.xlu0 %v2122_v10, %s1764_s23  ;;  %s377_s10 = scalar_lea.vmem [#allocation17], %s1186_s30  ;;  %s1669_s30 = sshll.u32 %s1774_s20, 4  ;;  %s1670_s30 = int_to_ptr.vmem [resolvable:$false] %s1669_s30 }
 0x1c2   : > { %s1047_s23 = sshll.u32 %s377_s10, 4  ;;  %s2195_s23 = int_to_ptr.vmem [resolvable:$true] %s1047_s23 }
 0x1c3   : > { %p1672_p4 = scmp.lt.s32.totalorder %s2195_s23, %s1670_s30 }
 0x1c5   : > { %813 = vrot.lane.b32.xlu0 %v2122_v10, %s1765_s19 }
 0x22b   : > { %v457_v12 = vpop.permute.xlu0 %456  ;;  %v572_v15 = vpop.permute.xlu1 %571 }
 0x22c   : > { %v463_v13 = vsel %vm458_vm2, %v457_v12, 0 }
 0x22d   : > { %1253 = vmatpush3.bf16.xpose.msra.mxu1 %v463_v13 }
 0x22e   : > { %1264 = vmatprep.subr.bf16.mxu1 %v1757_v0 }
 0x22f   : > { %v574_v14 = vpop.permute.xlu0 %573  ;;  %v695_v17 = vpop.permute.xlu1 %694 }
 0x230   : > { %v579_v16 = vsel %vm458_vm2, %v574_v14, 0  ;;  %v700_v18 = vsel %vm458_vm2, %v695_v17, 0 }
 0x233   : > { %v816_v19 = vpop.permute.xlu1 %815  ;;  %v693_v20 = vpop.permute.xlu0 %692 }
 0x234   : > { %1255 = vmatmul.mubr.msk.bf16.vlgmr.msra.gmra.mrb[0].mxu1 %vm458_vm2, %v2122_v10  ;;  %v821_v21 = vsel %vm458_vm2, %v816_v19, 0 }
 0x235   : > { %1265 = vmatpush3.bf16.xpose.msra.mxu1 %v579_v16  ;;  %1266 = vmatprep.mubr.msk.bf16.mxu1 %vm1758_vm0, %v1757_v0 }
 0x236   : > { %1276 = vmatprep.subr.bf16.mxu1 %v1757_v0 }
 0x237   : > { %v814_v22 = vpop.permute.xlu0 %813 }
 0x23c   : > { %1267 = vmatmul.mubr.msk.bf16.vlgmr.msra.gmra.mrb[4].mxu1 %vm458_vm2, %v572_v15 }
 0x23d   : > { %1277 = vmatpush3.bf16.xpose.msra.mxu1 %v700_v18  ;;  %1278 = vmatprep.mubr.msk.bf16.mxu1 %vm1758_vm0, %v1757_v0 }
 0x23e   : > { %1288 = vmatprep.subr.bf16.mxu1 %v1757_v0 }
 0x244   : > { %1279 = vmatmul.mubr.msk.bf16.vlgmr.msra.gmra.mrb[8].mxu1 %vm458_vm2, %v693_v20 }
 0x245   : > { %1289 = vmatpush3.bf16.xpose.msra.mxu1 %v821_v21  ;;  %1290 = vmatprep.mubr.msk.bf16.mxu1 %vm1758_vm0, %v1757_v0 }
 0x246   : > { %1300 = vmatprep.subr.bf16.mxu1 %v1757_v0 }
 0x24c   : > { %1291 = vmatmul.mubr.msk.bf16.vlgmr.msra.gmra.mrb[12].mxu1 %vm458_vm2, %v814_v22 }
 0x24d   : > { %1304 = vmatprep.mubr.msk.bf16.mxu1 %vm1758_vm0, %v1757_v0 }
 0x307   : > { %v499_v26 = vpop.f32.mrb[0].mxu1 }
 0x308   : > { %v505_v29 = vmul.f32 0.35355338, %v499_v26  ;;  %v1256_v30 = vpop.f32.mrb[1].mxu1 }
 0x309   : > { %v502_v31 = vpop.f32.mrb[2].mxu1 }
 0x30a   : > { %v1257_v32 = vpop.f32.mrb[3].mxu1  ;;  %v506_v33 = vadd.f32 %v505_v29, %v385_v28 }
 0x30c   : > { %v507_v34 = vsel %vm458_vm2, %v506_v33, -inf }
 0x30d   : > { %508 = vmax.xlane.f32.xlu1 %v507_v34 }
 0x30f   : > { %v615_v35 = vpop.f32.mrb[4].mxu1 }
 0x310   : > { %v621_v36 = vmul.f32 0.35355338, %v615_v35  ;;  %v1268_v37 = vpop.f32.mrb[5].mxu1 }
 0x311   : > { %v618_v38 = vpop.f32.mrb[6].mxu1 }
 0x312   : > { %v1269_v39 = vpop.f32.mrb[7].mxu1  ;;  %v622_v40 = vadd.f32 %v621_v36, %v385_v28 }
 0x314   : > { %v623_v41 = vsel %vm458_vm2, %v622_v40, -inf }
 0x315   : > { %624 = vmax.xlane.f32.xlu0 %v623_v41 }
 0x317   : > { %v736_v42 = vpop.f32.mrb[8].mxu1 }
 0x318   : > { %v742_v43 = vmul.f32 0.35355338, %v736_v42  ;;  %v1280_v44 = vpop.f32.mrb[9].mxu1 }
 0x319   : > { %v739_v45 = vpop.f32.mrb[10].mxu1 }
 0x31a   : > { %v1281_v46 = vpop.f32.mrb[11].mxu1  ;;  %v743_v47 = vadd.f32 %v742_v43, %v385_v28 }
 0x31c   : > { %v744_v48 = vsel %vm458_vm2, %v743_v47, -inf }
 0x31d   : > { %745 = vmax.xlane.f32.xlu0 %v744_v48  ;;  %v1437_v48 = vld [vmem:[#allocation11] sm:$0xff]  }
 0x31e   : > { %1301 = vmatpush3.bf16.msra.mxu1 %v1437_v48 }
 0x31f   : > { %v857_v49 = vpop.f32.mrb[12].mxu1  ;;  %1302 = vmatprep.subr.bf16.mxu1 %v1757_v0 }
 0x320   : > { %v863_v50 = vmul.f32 0.35355338, %v857_v49  ;;  %v1292_v51 = vpop.f32.mrb[13].mxu1  ;;  %v1438_v49 = vld [vmem:[#allocation11 + $0x8] sm:$0xff]  }
 0x321   : > { %v860_v52 = vpop.f32.mrb[14].mxu1 }
 0x322   : > { %v1293_v53 = vpop.f32.mrb[15].mxu1  ;;  %v864_v54 = vadd.f32 %v863_v50, %v385_v28  ;;  %1303 = vmatpush3.bf16.msra.mxu1 %v1438_v49 }
 0x324   : > { %v865_v55 = vsel %vm458_vm2, %v864_v54, -inf }
 0x325   : > { %866 = vmax.xlane.f32.xlu1 %v865_v55 }
 0x39a   : > { %v509_v56 = vpop.xlane.xlu1 %508 }
 0x39b   : > { %v510_v57 = vsub.f32 %v506_v33, %v509_v56 }
 0x39d   : > { %v511_v58 = vmul.f32 1.442695, %v510_v57 }
 0x39f   : > { %1439 = vpow2.f32 %v511_v58 }
 0x3a2   : > { %v625_v59 = vpop.xlane.xlu0 %624 }
 0x3a3   : > { %v626_v60 = vsub.f32 %v622_v40, %v625_v59 }
 0x3a5   : > { %v627_v61 = vmul.f32 1.442695, %v626_v60 }
 0x3a7   : > { %1441 = vpow2.f32 %v627_v61 }
 0x3a9   : > { %v1440_v62 = vpop.eup %1439 }
 0x3aa   : > { %v746_v63 = vpop.xlane.xlu0 %745  ;;  %v513_v1 = vsel %vm458_vm2, %v1440_v62, 0.0 }
 0x3ab   : > { %v747_v2 = vsub.f32 %v743_v47, %v746_v63  ;;  %514 = vadd.xlane.f32.xlu0 %v513_v1  ;;  %v1209_v63 = vld [vmem:[#allocation13] ss:$0 sm:$0xff] }
 0x3ad   : > { %v748_v4 = vmul.f32 1.442695, %v747_v2 }
 0x3af   : > { %1443 = vpow2.f32 %v748_v4 }
 0x3b1   : > { %v1442_v5 = vpop.eup %1441 }
 0x3b2   : > { %v629_v6 = vsel %vm458_vm2, %v1442_v5, 0.0  ;;  %v867_v9 = vpop.xlane.xlu1 %866 }
 0x3b3   : > { %630 = vadd.xlane.f32.xlu1 %v629_v6  ;;  %v868_v11 = vsub.f32 %v864_v54, %v867_v9 }
 0x3b5   : > { %v869_v12 = vmul.f32 1.442695, %v868_v11 }
 0x3b7   : > { %1445 = vpow2.f32 %v869_v12 }
 0x3b9   : > { %v1444_v7 = vpop.eup %1443 }
 0x3ba   : > { %v750_v8 = vsel %vm458_vm2, %v1444_v7, 0.0 }
 0x3bb   : > { %751 = vadd.xlane.f32.xlu0 %v750_v8 }
 0x3c1   : > { %v1446_v13 = vpop.eup %1445 }
 0x3c2   : > { %v871_v14 = vsel %vm458_vm2, %v1446_v13, 0.0 }
 0x3c4   : > { %635 = vrot.lane.b32.xlu1 %v2122_v10, %s1767_s28  ;;  %s2193_s28 = scalar_lea.hbm %s2246_s8, %s1216_s13 }
 0x3d1   : > { %519 = vrot.lane.b32.xlu0 %v2122_v10, %s1768_s29  ;;  %s1034_s29 = scalar_lea.sflag [#allocation7], %s2085_s26 }
 0x3d5   : > { %877 = vrot.lane.b32.xlu0 %v2122_v10, %s1769_s12  ;;  %s1665_s12 = scalar_lea.vmem %s2195_s23, 128 }
 0x3d6   : > { %p1666_p9 = scmp.ne.s32.totalorder %s2195_s23, %s1665_s12 }
 0x3d8   : > { %p1667_p1 = pnand %p1666_p9, %p2266_p12 }
 0x3da   : > { %p1668_p2 = pneg %p1667_p1 }
 0x3e8   : > { %872 = vadd.xlane.f32.xlu1 %v871_v14 }
 0x3f9   : > { %756 = vrot.lane.b32.xlu1 %v2122_v10, %s1770_s25  ;;  %s1671_s25 = scalar_lea.vmem %s1670_s30, 256 }
 0x3fa   : > { %p1673_p6 = scmp.lt.s32.totalorder %s1671_s25, %s1665_s12 }
 0x3fc   : > { %p1674_p5 = por %p1673_p6, %p1672_p4 }
 0x3fe   : > { %p1675_p3 = pnand %p1674_p5, %p1668_p2 }
 0x438   : > { %v515_v15 = vpop.xlane.xlu0 %514 }
 0x439   : > { %1447 = vrcp.f32 %v515_v15 }
 0x440   : > { %v631_v16 = vpop.xlane.xlu1 %630 }
 0x441   : > { %1449 = vrcp.f32 %v631_v16 }
 0x443   : > { %v1448_v17 = vpop.eup %1447 }
 0x444   : > { %v517_v19 = vmul.f32 %v1448_v17, %v1440_v62  ;;  %v636_v22 = vpop.permute.xlu1 %635 }
 0x445   : > { %v641_v25 = vsel %vm524_vm4, %v636_v22, 0 }
 0x446   : > { %v518_v23 = vpack.c.bf16 %v517_v19, %v517_v19 }
 0x448   : > { %v752_v18 = vpop.xlane.xlu0 %751 }
 0x449   : > { %1451 = vrcp.f32 %v752_v18 }
 0x44b   : > { %v1450_v24 = vpop.eup %1449 }
 0x44c   : > { %v520_v20 = vpop.permute.xlu0 %519  ;;  %v633_v10 = vmul.f32 %v1450_v24, %v1442_v5 }
 0x44d   : > { %v526_v21 = vsel %vm524_vm4, %v520_v20, 0  ;;  %v1214_v20 = vld [vmem:[#allocation16] ss:$0 sm:$0xff] }
 0x44e   : > { %1259 = vmatpush3.bf16.msra.mxu0 %v526_v21  ;;  %v634_v26 = vpack.c.bf16 %v633_v10, %v633_v10 }
 0x44f   : > { %1270 = vmatprep.subr.bf16.mxu0 %v1757_v0 }
 0x450   : > { %v878_v32 = vpop.permute.xlu0 %877 }
 0x451   : > { %1261 = vmatmul.mubr.msk.bf16.vlgmr.msra.gmra.mrb[4].mxu0 %vm458_vm2, %v518_v23  ;;  %v883_v34 = vsel %vm524_vm4, %v878_v32, 0 }
 0x452   : > { %1271 = vmatpush3.bf16.msra.mxu0 %v641_v25  ;;  %1272 = vmatprep.mubr.msk.bf16.mxu0 %vm1758_vm0, %v1757_v0 }
 0x453   : > { %1282 = vmatprep.subr.bf16.mxu0 %v1757_v0  ;;  %v1452_v27 = vpop.eup %1451 }
 0x454   : > { %v754_v29 = vmul.f32 %v1452_v27, %v1444_v7 }
 0x456   : > { %v755_v33 = vpack.c.bf16 %v754_v29, %v754_v29 }
 0x459   : > { %1273 = vmatmul.mubr.msk.bf16.vlgmr.msra.gmra.mrb[8].mxu0 %vm458_vm2, %v634_v26 }
 0x45a   : > { %1284 = vmatprep.mubr.msk.bf16.mxu0 %vm1758_vm0, %v1757_v0 }
 0x475   : > { %v873_v28 = vpop.xlane.xlu1 %872 }
 0x476   : > { %1453 = vrcp.f32 %v873_v28 }
 0x479   : > { %v757_v30 = vpop.permute.xlu1 %756 }
 0x47a   : > { %v762_v31 = vsel %vm524_vm4, %v757_v30, 0 }
 0x47b   : > { %1283 = vmatpush3.bf16.msra.mxu0 %v762_v31 }
 0x47c   : > { %1294 = vmatprep.subr.bf16.mxu0 %v1757_v0 }
 0x47e   : > { %1285 = vmatmul.mubr.msk.bf16.vlgmr.msra.gmra.mrb[12].mxu0 %vm458_vm2, %v755_v33 }
 0x47f   : > { %1295 = vmatpush3.bf16.msra.mxu0 %v883_v34  ;;  %1296 = vmatprep.mubr.msk.bf16.mxu0 %vm1758_vm0, %v1757_v0 }
 0x480   : > { %v1454_v35 = vpop.eup %1453 }
 0x481   : > { %v875_v36 = vmul.f32 %v1454_v35, %v1446_v13 }
 0x483   : > { %v876_v37 = vpack.c.bf16 %v875_v36, %v875_v36 }
 0x486   : > { %1297 = vmatmul.mubr.msk.bf16.vlgmr.msra.gmra.mrb[16].mxu0 %vm458_vm2, %v876_v37 }
 0x524   : > { %v562_v38 = vpop.f32.mrb[4].mxu0 }
 0x525   : > { %v568_v39 = vpack.c.bf16 %v562_v38, %v562_v38  ;;  %v1262_v40 = vpop.f32.mrb[5].mxu0 }
 0x526   : > { %v565_v41 = vpop.f32.mrb[6].mxu0 }
 0x527   : > { %570 = vst.msk [vmem:[#allocation2] sm:$0xf] %vm569_vm5, %v568_v39  ;;  %v1263_v42 = vpop.f32.mrb[7].mxu0 }
 0x52c   : > { %v677_v43 = vpop.f32.mrb[8].mxu0 }
 0x52d   : > { %v1219_v44 = vpack.c.bf16 %v677_v43, %v677_v43  ;;  %v1274_v45 = vpop.f32.mrb[9].mxu0 }
 0x52e   : > { %v680_v46 = vpop.f32.mrb[10].mxu0 }
 0x52f   : > { %687 = vrot.lane.b32.xlu1 %v1219_v44, %s1771_s21  ;;  %v1275_v47 = vpop.f32.mrb[11].mxu0 }
 0x551   : > { %v798_v50 = vpop.f32.mrb[12].mxu0 }
 0x552   : > { %v1220_v51 = vpack.c.bf16 %v798_v50, %v798_v50  ;;  %v1286_v52 = vpop.f32.mrb[13].mxu0 }
 0x553   : > { %v801_v53 = vpop.f32.mrb[14].mxu0 }
 0x554   : > { %808 = vrot.lane.b32.xlu0 %v1220_v51, %s1772_s0  ;;  %v1287_v54 = vpop.f32.mrb[15].mxu0 }
 0x559   : > { %v919_v55 = vpop.f32.mrb[16].mxu0 }
 0x55a   : > { %v1221_v56 = vpack.c.bf16 %v919_v55, %v919_v55  ;;  %v1298_v57 = vpop.f32.mrb[17].mxu0 }
 0x55b   : > { %v922_v58 = vpop.f32.mrb[18].mxu0 }
 0x55c   : > { %929 = vrot.lane.b32.xlu1 %v1221_v56, %s1773_s9  ;;  %v1299_v59 = vpop.f32.mrb[19].mxu0 }
 0x5a1   : > { %v688_v60 = vpop.permute.xlu1 %687 }
 0x5a2   : > { %691 = vst.msk [vmem:[#allocation2] sm:$0xf] %vm690_vm6, %v688_v60 }
 0x5c6   : > { %v809_v61 = vpop.permute.xlu0 %808 }
 0x5c7   : > { %812 = vst.msk [vmem:[#allocation2] sm:$0xf] %vm811_vm7, %v809_v61 }
 0x5ce   : > { %v930_v0 = vpop.permute.xlu1 %929 }
 0x5cf   : > { %933 = vst.msk [vmem:[#allocation2] sm:$0xf] %vm932_vm8, %v930_v0 }
 0x5d6   : > { %v934_v62 = vld [vmem:[#allocation2] sm:$0xf] }
 0x5d7   : > { %1305 = vmatmul.mubr.msk.bf16.vlgmr.msra.gmra.mrb[16].mxu1 %vm410_vm1, %v934_v62 }
 0x6aa   : > { %v995_v1 = vpop.f32.mrb[16].mxu1 }
 0x6ab   : > { %v996_v2 = vadd.f32 %v1209_v63, %v995_v1  ;;  %v1306_v4 = vpop.f32.mrb[17].mxu1 }
 0x6ac   : > { %v998_v5 = vpop.f32.mrb[18].mxu1 }
 0x6ad   : > { %v1307_v6 = vpop.f32.mrb[19].mxu1  ;;  %v1001_v7 = vadd.f32 %v996_v2, %v2113_v3  ;;  %v1213_v3 = vld [vmem:[#allocation14] ss:$0 sm:$0xff] }
 0x6af   : > { %v1002_v8 = vsel %vm410_vm1, %v1001_v7, 0.0 }
 0x6b0   : > { %1003 = vadd.xlane.f32.xlu0 %v1002_v8 }
 0x73d   : > { %v1004_v9 = vpop.xlane.xlu0 %1003 }
 0x73e   : > { %v1006_v11 = vmul.f32 0.03125, %v1004_v9 }
 0x740   : > { %v1007_v12 = vsub.f32 %v1001_v7, %v1006_v11 }
 0x742   : > { %v1008_v13 = vmul.f32 %v1007_v12, %v1007_v12 }
 0x744   : > { %v1009_v14 = vsel %vm410_vm1, %v1008_v13, 0.0 }
 0x745   : > { %1010 = vadd.xlane.f32.xlu1 %v1009_v14 }
 0x7d2   : > { %v1011_v15 = vpop.xlane.xlu1 %1010 }
 0x7d3   : > { %v1012_v16 = vmul.f32 0.03125, %v1011_v15 }
 0x7d5   : > { %v1013_v17 = vadd.f32 1e-05, %v1012_v16 }
 0x7d7   : > { %1455 = vrsqrt.f32 %v1013_v17 }
 0x7e1   : > { %v1456_v18 = vpop.eup %1455 }
 0x7e2   : > { %v1015_v19 = vmul.f32 %v1456_v18, %v1007_v12 }
 0x7e4   : > { %v1023_v21 = vmul.f32 %v1213_v3, %v1015_v19 }
 0x7e6   : > { %v1031_v22 = vadd.f32 %v1214_v20, %v1023_v21 }
 0x7e8   : > { %1032 = vst.msk [vmem:[%s377_s10] sm:$0xff] %vm410_vm1, %v1031_v22 }
 0x7e9   : > { %1678 = shalt.err (!%p1675_p3)
}
 0x7ea   : > { %s1679_s26 = scalar_lea.hbm %s2193_s28, 128  ;;  %s1683_s9 = scalar_lea.hbm %s2246_s8, 256 }
 0x7eb   : > { %p1680_p7 = scmp.ne.s32.totalorder %s2193_s28, %s1679_s26  ;;  %p1684_p11 = scmp.lt.u32.totalorder %s2193_s28, %s2246_s8 }
 0x7ec   : > { %p1685_p8 = scmp.lt.u32.totalorder %s1683_s9, %s1679_s26  ;;  %p1687_p9 = scmp.lt.u32.totalorder %s1679_s26, %s2193_s28 }
 0x7ed   : > { %p1681_p13 = pnand %p1680_p7, %p2266_p12 }
 0x7ee   : > { %p1686_p10 = por %p1685_p8, %p1684_p11 }
 0x7ef   : > { %p1682_p0 = pneg %p1681_p13 }
 0x7f0   : > { %p1688_p1 = por %p1687_p9, %p1686_p10 }
 0x7f2   : > { %p1689_p2 = pnand %p1688_p1, %p1682_p0 }
 0x7f4   : > { %1692 = shalt.err (!%p1689_p2)
}
 0x7f5   : > { %1334 = dma.vmem_to_hbm [thread:$0]  (%p2266_p12), %s2195_s23, 128, %s2193_s28, %s1034_s29  }
 0x7f6 PF: > { %s1059_s19 = sand.u32 1, %s1733_s15   ;;  %p2267_p4 = scmp.ne.s32.totalorder %s2257_s27, 0 }
 0x7f7   : > { %p2268_p6 = scmp.ge.s32.totalorder %s1745_s18, 2  ;;  %s1060_s11 = scalar_lea.sflag [#allocation7], %s1059_s19 }
 0x7f9   : > { %p1360_p5 = pnand %p2268_p6, %p2267_p4 }
 0x7fb   : > { %1728 = dma.done.wait (!%p1360_p5), %s1060_s11, 128  }
 0x7fc   : > { %1730 = vsyncadd (!%p1360_p5), %s1060_s11, 4294967168  ;;  %p28_p3 = scmp.ge.s32.totalorder %s2009_s24, 4   ;;  %s2269_s15 = smov %s1737_s16 }
 0x7fd   : > { %s2270_s16 = smov %s1741_s17  ;;  %s2271_s17 = smov %s2020_s14 }
 0x7fe   : > { %s2272_s18 = smov %s2009_s24  ;;  %30 = sbr.rel (!%p28_p3) target bundleno = 20 (0x14), region = 117 }
 0x805   :  { %1065 = vsyncpa [#allocation6], 1 }
 0x806   :  { %1067 = vsyncpa [#allocation6 + $0x1], 1 }
 0x807   :  { %1068 = vsyncpa [#allocation9], 1 }
 0x808   :  { %1069 = vsyncpa [#allocation12], 1 }
 0x809   :  { %1070 = vsyncpa [#allocation15], 1 }
 0x80a   :  { %1071 = vsyncpa [#allocation7], 1 }
 0x80b   :  { %1073 = vsyncpa [#allocation7 + $0x1], 1 }

</bundles_post_ra>
